<compile_context>
chip_gen: v5e
topology: v5e:2x2
jax: 0.10.0
libtpu: 0.0.40
codegen_flags: <defaults>
</compile_context>

<pallas_src>
import functools

import jax
import jax.numpy as jnp
from jax import lax
from jax.experimental import pallas as pl
from jax.experimental.pallas import tpu as pltpu

EPS = 1e-5  # PyTorch LayerNorm default eps


def _round_up(x, m):
    return (x + m - 1) // m * m


def _layernorm(x, g, b):
    mu = jnp.mean(x, axis=-1, keepdims=True)
    xc = x - mu
    var = jnp.mean(xc * xc, axis=-1, keepdims=True)
    return xc * lax.rsqrt(var + EPS) * g + b


def _gelu(x):
    # TODO(synk): PyTorch nn.GELU() is exact erf GELU; tanh approximation used
    # here for guaranteed Mosaic lowering of the transcendental.
    return jax.nn.gelu(x, approximate=True)


def vit_kernel(
    patches_ref, We_ref, add_ref,
    ln1g_ref, ln1b_ref, Wqkv_ref, Wo_ref, bo_ref,
    ln2g_ref, ln2b_ref, W1_ref, b1_ref, W2_ref, b2_ref,
    lnhg_ref, lnhb_ref, Wh_ref, bh_ref,
    out_ref,
    tok_ref,
    *, depth, num_heads, dim_per_head, seq, seq_pad, bblk, mlp_chunks,
):
    inner = num_heads * dim_per_head
    dim = We_ref.shape[1]
    mlp_dim = W1_ref.shape[2]
    scale = dim_per_head ** -0.5
    M = bblk * seq_pad
    bf = jnp.bfloat16
    f32 = jnp.float32

    l = pl.program_id(1)  # layer index (streamed weights)

    # ---- first layer of each batch block: patch embed + cls token + pos ----
    # Row 0 of each image's patch block is a zero pseudo-patch; add_ref carries
    # cls+pos[0] for that row, be+pos[i] for real patch rows and 0 for padding,
    # so a single aligned store builds the token matrix.
    @pl.when(l == 0)
    def _():
        xp = patches_ref[...].reshape(M, patches_ref.shape[-1])           # bf16
        emb = jnp.dot(xp, We_ref[...], preferred_element_type=f32)        # (M, dim)
        tok = emb.reshape(bblk, seq_pad, dim) + add_ref[...][None]
        tok_ref[...] = tok.reshape(M, dim)

    x = tok_ref[...]                                                      # (M, dim) f32

    # key-padding mask: padded rows (>= seq) must not be attended to
    kidx = lax.broadcasted_iota(jnp.int32, (1, 1, seq_pad), 2)
    neg = jnp.where(kidx < seq, jnp.float32(0.0), jnp.float32(-1e30))

    # ---- attention (one layer per grid step) ----
    h = _layernorm(x, ln1g_ref[0], ln1b_ref[0]).astype(bf)
    # single qkv matmul; cast the big intermediate to bf16 ONCE
    qkv = jnp.dot(h, Wqkv_ref[0], preferred_element_type=f32).astype(bf)  # (M, 3*inner)

    heads_out = []
    for hd in range(num_heads):
        lo = hd * dim_per_head
        q = qkv[:, lo:lo + dim_per_head].reshape(bblk, seq_pad, dim_per_head)
        k = qkv[:, inner + lo:inner + lo + dim_per_head].reshape(bblk, seq_pad, dim_per_head)
        v = qkv[:, 2 * inner + lo:2 * inner + lo + dim_per_head].reshape(bblk, seq_pad, dim_per_head)
        # scores batched over the images of this block (bf16 in, f32 acc)
        s = jnp.einsum('bqd,bkd->bqk', q, k, preferred_element_type=f32) * scale + neg
        s = s - jnp.max(s, axis=-1, keepdims=True)
        p = jnp.exp(s)
        p = p * pl.reciprocal(jnp.sum(p, axis=-1, keepdims=True), approx=True)
        o = jnp.einsum('bqk,bkd->bqd', p.astype(bf), v, preferred_element_type=f32)
        heads_out.append(o.astype(bf).reshape(M, dim_per_head))           # bf16
    o_cat = jnp.concatenate(heads_out, axis=-1)                           # (M, inner) bf16
    attn = jnp.dot(o_cat, Wo_ref[0], preferred_element_type=f32) + bo_ref[0]
    x = x + attn

    # ---- MLP (hidden dim chunked to bound the f32 intermediate) ----
    h2 = _layernorm(x, ln2g_ref[0], ln2b_ref[0]).astype(bf)
    if mlp_chunks == 1:
        hc = jnp.dot(h2, W1_ref[0], preferred_element_type=f32) + b1_ref[0]
        hc = _gelu(hc).astype(bf)
        ff = jnp.dot(hc, W2_ref[0], preferred_element_type=f32)
    else:
        csz = mlp_dim // mlp_chunks
        ff = None
        for ci in range(mlp_chunks):
            lo = ci * csz
            hc = jnp.dot(h2, W1_ref[0, :, lo:lo + csz],
                         preferred_element_type=f32) + b1_ref[0, :, lo:lo + csz]
            hc = _gelu(hc).astype(bf)
            part = jnp.dot(hc, W2_ref[0, lo:lo + csz, :], preferred_element_type=f32)
            ff = part if ff is None else ff + part
    x = x + ff + b2_ref[0]
    tok_ref[...] = x

    # ---- last layer: 'cls' pooling + LayerNorm + head (lane-dense output) ----
    @pl.when(l == depth - 1)
    def _():
        pooled = x.reshape(bblk, seq_pad, dim)[:, 0:1, :].reshape(bblk, dim)
        hp = _layernorm(pooled, lnhg_ref[...], lnhb_ref[...])
        out_ref[...] = jnp.dot(hp.astype(bf), Wh_ref[...],
                               preferred_element_type=f32) + bh_ref[...]


def _device_kind():
    try:
        return jax.devices()[0].device_kind.lower()
    except Exception:
        return ""


def vit_forward_pallas(x_nchw, params, *, patch, depth, num_heads, dim_per_head,
                       block_b=None):
    b, c, H, W = x_nchw.shape
    ph = pw = patch
    assert H % ph == 0 and W % pw == 0
    n_patches = (H // ph) * (W // pw)
    patch_dim = c * ph * pw
    dim = params["We"].shape[1]
    inner = num_heads * dim_per_head
    mlp_dim = params["W1"].shape[2]
    num_classes = params["Wh"].shape[1]
    S = n_patches + 1
    S_pad = _round_up(S, 16)              # bf16/f32 sublane-aligned sequence
    NC_pad = _round_up(num_classes, 128)  # lane-dense output slab

    # ---- generation-aware tuning ----
    kind = _device_kind()
    is_v7 = "v7" in kind
    # v7x: 64 MiB VMEM / TensorCore; v5e/v6e: 128 MiB
    vmem_budget = (56 if is_v7 else 100) * 1024 * 1024

    # chunk the MLP hidden dim when it is large and 128-lane-aligned chunks exist
    mlp_chunks = 1
    for csz in (1024, 512):
        if mlp_dim % csz == 0 and mlp_dim // csz >= 2:
            mlp_chunks = mlp_dim // csz
            break

    def vmem_estimate(bb):
        m = bb * S_pad
        layer_w = 2 * 2 * (dim * 3 * inner + inner * dim + 2 * dim * mlp_dim)  # bf16 x2 buf
        layer_small = 2 * 4 * (6 * dim + mlp_dim)                              # f32 ln/bias x2 buf
        consts = (2 * (patch_dim * dim + dim * NC_pad)
                  + 4 * (S_pad * dim + 2 * dim + NC_pad)
                  + 2 * bb * S_pad * patch_dim)                                # single-buffered
        scratch = 4 * m * dim
        act = (4 * 2 * m * dim + 2 * m * 3 * inner + 2 * m * inner
               + 4 * bb * S_pad * S_pad + 4 * m * (mlp_dim // mlp_chunks))
        out = 2 * 4 * bb * NC_pad
        return layer_w + layer_small + consts + scratch + act + out

    if block_b is None:
        if is_v7 and b >= 2:
            pref = max(1, min(8, b // 2))   # keep nb >= 2 so both TensorCores get work
        else:
            pref = min(16, b)               # bigger blocks on 128 MiB chips
        divisors = [d for d in range(1, b + 1) if b % d == 0]
        block_b = max(d for d in divisors if d <= pref)
        while block_b > 1 and vmem_estimate(block_b) > 0.85 * vmem_budget:
            block_b = max(d for d in divisors if d < block_b)
    assert b % block_b == 0
    nb = b // block_b
    M = block_b * S_pad

    # NCHW -> (B, N, patch_dim) exactly as the PyTorch view/permute/reshape
    patches = (
        x_nchw.reshape(b, c, H // ph, ph, W // pw, pw)
        .transpose(0, 2, 4, 3, 5, 1)
        .reshape(b, n_patches, patch_dim)
    )
    # row 0 = zero pseudo-patch (becomes cls), rows 1..N = patches, rest = pad
    patches_pad = jnp.zeros((b, S_pad, patch_dim), jnp.float32)
    patches_pad = patches_pad.at[:, 1:1 + n_patches, :].set(patches)
    patches_pad = patches_pad.astype(jnp.bfloat16)

    # additive per-row vector: cls+pos[0] | be+pos[1..N] | 0 (padding)
    addvec = jnp.zeros((S_pad, dim), jnp.float32)
    addvec = addvec.at[0, :].set(params["cls"][0] + params["pos"][0])
    addvec = addvec.at[1:S, :].set(params["be"] + params["pos"][1:S])

    Wh_pad = jnp.zeros((dim, NC_pad), jnp.float32).at[:, :num_classes].set(params["Wh"])
    bh_pad = jnp.zeros((1, NC_pad), jnp.float32).at[:, :num_classes].set(params["bh"])

    bf = lambda a: a.astype(jnp.bfloat16)

    # constant-index inputs: single-buffered (second pipeline buffer is pure waste)
    def const_spec(shape):
        n = len(shape)
        return pl.BlockSpec(shape, lambda i, l, _n=n: (0,) * _n,
                            pipeline_mode=pl.Buffered(1))

    def layer_spec(shape):  # leading axis streamed by layer id (default double-buffered)
        n = len(shape) - 1
        return pl.BlockSpec(shape, lambda i, l, _n=n: (l,) + (0,) * _n)

    in_specs = [
        pl.BlockSpec((block_b, S_pad, patch_dim), lambda i, l: (i, 0, 0),
                     pipeline_mode=pl.Buffered(1)),
        const_spec((patch_dim, dim)),
        const_spec((S_pad, dim)),
        layer_spec((1, 1, dim)), layer_spec((1, 1, dim)),
        layer_spec((1, dim, 3 * inner)), layer_spec((1, inner, dim)), layer_spec((1, 1, dim)),
        layer_spec((1, 1, dim)), layer_spec((1, 1, dim)),
        layer_spec((1, dim, mlp_dim)), layer_spec((1, 1, mlp_dim)),
        layer_spec((1, mlp_dim, dim)), layer_spec((1, 1, dim)),
        const_spec((1, dim)), const_spec((1, dim)),
        const_spec((dim, NC_pad)), const_spec((1, NC_pad)),
    ]

    kernel = functools.partial(
        vit_kernel, depth=depth, num_heads=num_heads, dim_per_head=dim_per_head,
        seq=S, seq_pad=S_pad, bblk=block_b, mlp_chunks=mlp_chunks)

    out = pl.pallas_call(
        kernel,
        grid=(nb, depth),
        in_specs=in_specs,
        out_specs=pl.BlockSpec((block_b, NC_pad), lambda i, l: (i, 0)),
        out_shape=jax.ShapeDtypeStruct((b, NC_pad), jnp.float32),
        scratch_shapes=[pltpu.VMEM((M, dim), jnp.float32)],
        compiler_params=pltpu.CompilerParams(
            dimension_semantics=("parallel", "arbitrary"),
            vmem_limit_bytes=vmem_budget),
    )(
        patches_pad, bf(params["We"]), addvec,
        params["ln1g"], params["ln1b"], bf(params["Wqkv"]), bf(params["Wo"]), params["bo"],
        params["ln2g"], params["ln2b"], bf(params["W1"]), params["b1"],
        bf(params["W2"]), params["b2"],
        params["lnhg"], params["lnhb"], bf(Wh_pad), bh_pad,
    )
    return out[:, :num_classes]  # (B, num_classes)


# ---------------- pure-JAX reference (mirrors bf16-at-matmul precision) ----------------
def vit_forward_ref(x_nchw, params, *, patch, depth, num_heads, dim_per_head):
    b, c, H, W = x_nchw.shape
    ph = pw = patch
    n_patches = (H // ph) * (W // pw)
    patch_dim = c * ph * pw
    inner = num_heads * dim_per_head
    scale = dim_per_head ** -0.5
    p = params

    def mm(a, w):  # bf16 inputs, f32 accumulation -- same convention as the kernel
        return jnp.dot(a.astype(jnp.bfloat16), w.astype(jnp.bfloat16),
                       preferred_element_type=jnp.float32)

    patches = (
        x_nchw.reshape(b, c, H // ph, ph, W // pw, pw)
        .transpose(0, 2, 4, 3, 5, 1)
        .reshape(b, n_patches, patch_dim)
    )

    def single(patches_b):
        tok = mm(patches_b, p["We"]) + p["be"][0]
        tokens = jnp.concatenate([p["cls"], tok], axis=0) + p["pos"]
        for l in range(depth):
            h = _layernorm(tokens, p["ln1g"][l], p["ln1b"][l])
            qkv = mm(h, p["Wqkv"][l])
            outs = []
            for hd in range(num_heads):
                lo, hi = hd * dim_per_head, (hd + 1) * dim_per_head
                q = qkv[:, lo:hi]
                k = qkv[:, inner + lo:inner + hi]
                v = qkv[:, 2 * inner + lo:2 * inner + hi]
                a = jax.nn.softmax(mm(q, k.T) * scale, axis=-1)
                outs.append(mm(a, v))
            attn = mm(jnp.concatenate(outs, axis=-1), p["Wo"][l]) + p["bo"][l]
            tokens = tokens + attn
            h2 = _layernorm(tokens, p["ln2g"][l], p["ln2b"][l])
            ff = mm(_gelu(mm(h2, p["W1"][l]) + p["b1"][l]), p["W2"][l]) + p["b2"][l]
            tokens = tokens + ff
        pooled = tokens[0:1]
        return (mm(_layernorm(pooled, p["lnhg"], p["lnhb"]), p["Wh"]) + p["bh"])[0]

    return jax.vmap(single)(patches)


# ---------------- deterministic parameter construction ----------------
def make_params(key, *, patch_dim, dim, depth, num_heads, dim_per_head, mlp_dim,
                n_patches, num_classes):
    inner = num_heads * dim_per_head
    S = n_patches + 1
    keys = jax.random.split(key, 16)
    nrm = lambda k, shp, s=0.02: (jax.random.normal(k, shp, jnp.float32) * s)
    return {
        "We": nrm(keys[0], (patch_dim, dim)),
        "be": nrm(keys[1], (1, dim)),
        "cls": jax.random.normal(keys[2], (1, dim), jnp.float32),     # torch.randn
        "pos": jax.random.normal(keys[3], (S, dim), jnp.float32),     # torch.randn
        "ln1g": jnp.ones((depth, 1, dim), jnp.float32),
        "ln1b": jnp.zeros((depth, 1, dim), jnp.float32),
        "Wqkv": nrm(keys[4], (depth, dim, 3 * inner)),
        "Wo": nrm(keys[5], (depth, inner, dim)),
        "bo": nrm(keys[6], (depth, 1, dim)),
        "ln2g": jnp.ones((depth, 1, dim), jnp.float32),
        "ln2b": jnp.zeros((depth, 1, dim), jnp.float32),
        "W1": nrm(keys[7], (depth, dim, mlp_dim)),
        "b1": nrm(keys[8], (depth, 1, mlp_dim)),
        "W2": nrm(keys[9], (depth, mlp_dim, dim)),
        "b2": nrm(keys[10], (depth, 1, dim)),
        "lnhg": jnp.ones((1, dim), jnp.float32),
        "lnhb": jnp.zeros((1, dim), jnp.float32),
        "Wh": nrm(keys[11], (dim, num_classes)),
        "bh": nrm(keys[12], (1, num_classes)),
    }


if __name__ == "__main__":
    # small ViT config consistent with the module's forward
    B, C, IMG, PATCH = 2, 4, 16, 4
    DIM, DEPTH, HEADS, DPH, MLP, NCLS = 32, 2, 2, 16, 64, 16
    N_PATCHES = (IMG // PATCH) ** 2
    PATCH_DIM = C * PATCH * PATCH

    key = jax.random.PRNGKey(0)
    kx, kp = jax.random.split(key)
    x = jax.random.normal(kx, (B, C, IMG, IMG), jnp.float32)
    params = make_params(kp, patch_dim=PATCH_DIM, dim=DIM, depth=DEPTH,
                         num_heads=HEADS, dim_per_head=DPH, mlp_dim=MLP,
                         n_patches=N_PATCHES, num_classes=NCLS)

    logits = vit_forward_pallas(x, params, patch=PATCH, depth=DEPTH,
                                num_heads=HEADS, dim_per_head=DPH)
    logits = jax.block_until_ready(logits)

    ref = vit_forward_ref(x, params, patch=PATCH, depth=DEPTH,
                          num_heads=HEADS, dim_per_head=DPH)
    ref = jax.block_until_ready(ref)

    assert logits.shape == (B, NCLS)
    assert jnp.allclose(logits, ref, atol=2e-3, rtol=2e-3), (
        f"mismatch: max abs diff {jnp.max(jnp.abs(logits - ref))}"
    )
    print("KERNEL_OK")
</pallas_src>

<mosaic_0001>
module attributes {stable_mosaic.version = 11 : i64} {
  func.func @vit_kernel(%arg0: i32, %arg1: i32, %arg2: memref<2x32x64xbf16, #tpu.memory_space<vmem>>, %arg3: memref<64x32xbf16, #tpu.memory_space<vmem>>, %arg4: memref<32x32xf32, #tpu.memory_space<vmem>>, %arg5: memref<1x1x32xf32, #tpu.memory_space<vmem>>, %arg6: memref<1x1x32xf32, #tpu.memory_space<vmem>>, %arg7: memref<1x32x96xbf16, #tpu.memory_space<vmem>>, %arg8: memref<1x32x32xbf16, #tpu.memory_space<vmem>>, %arg9: memref<1x1x32xf32, #tpu.memory_space<vmem>>, %arg10: memref<1x1x32xf32, #tpu.memory_space<vmem>>, %arg11: memref<1x1x32xf32, #tpu.memory_space<vmem>>, %arg12: memref<1x32x64xbf16, #tpu.memory_space<vmem>>, %arg13: memref<1x1x64xf32, #tpu.memory_space<vmem>>, %arg14: memref<1x64x32xbf16, #tpu.memory_space<vmem>>, %arg15: memref<1x1x32xf32, #tpu.memory_space<vmem>>, %arg16: memref<1x32xf32, #tpu.memory_space<vmem>>, %arg17: memref<1x32xf32, #tpu.memory_space<vmem>>, %arg18: memref<32x128xbf16, #tpu.memory_space<vmem>>, %arg19: memref<1x128xf32, #tpu.memory_space<vmem>>, %arg20: memref<2x128xf32, #tpu.memory_space<vmem>>, %arg21: memref<64x32xf32, #tpu.memory_space<vmem>>) attributes {dimension_semantics = [#tpu.dimension_semantics<parallel>, #tpu.dimension_semantics<arbitrary>], iteration_bounds = array<i64: 1, 2>, scalar_prefetch = 0 : i64, scratch_operands = 1 : i64, tpu.core_type = #tpu.core_type<tc>, window_params = [{pipeline_mode = #tpu.pipeline_mode<synchronous>, transform_indices = @transform_0, window_bounds = array<i64: 2, 32, 64>}, {pipeline_mode = #tpu.pipeline_mode<synchronous>, transform_indices = @transform_1, window_bounds = array<i64: 64, 32>}, {pipeline_mode = #tpu.pipeline_mode<synchronous>, transform_indices = @transform_2, window_bounds = array<i64: 32, 32>}, {transform_indices = @transform_3, window_bounds = array<i64: 1, 1, 32>}, {transform_indices = @transform_4, window_bounds = array<i64: 1, 1, 32>}, {transform_indices = @transform_5, window_bounds = array<i64: 1, 32, 96>}, {transform_indices = @transform_6, window_bounds = array<i64: 1, 32, 32>}, {transform_indices = @transform_7, window_bounds = array<i64: 1, 1, 32>}, {transform_indices = @transform_8, window_bounds = array<i64: 1, 1, 32>}, {transform_indices = @transform_9, window_bounds = array<i64: 1, 1, 32>}, {transform_indices = @transform_10, window_bounds = array<i64: 1, 32, 64>}, {transform_indices = @transform_11, window_bounds = array<i64: 1, 1, 64>}, {transform_indices = @transform_12, window_bounds = array<i64: 1, 64, 32>}, {transform_indices = @transform_13, window_bounds = array<i64: 1, 1, 32>}, {pipeline_mode = #tpu.pipeline_mode<synchronous>, transform_indices = @transform_14, window_bounds = array<i64: 1, 32>}, {pipeline_mode = #tpu.pipeline_mode<synchronous>, transform_indices = @transform_15, window_bounds = array<i64: 1, 32>}, {pipeline_mode = #tpu.pipeline_mode<synchronous>, transform_indices = @transform_16, window_bounds = array<i64: 32, 128>}, {pipeline_mode = #tpu.pipeline_mode<synchronous>, transform_indices = @transform_17, window_bounds = array<i64: 1, 128>}, {transform_indices = @transform_18, window_bounds = array<i64: 2, 128>}]} {
    %c0_i32 = arith.constant 0 : i32
    %0 = arith.cmpi eq, %arg1, %c0_i32 : i32
    %1 = arith.extui %0 : i1 to i32
    %c0_i32_0 = arith.constant 0 : i32
    %2 = arith.cmpi ne, %1, %c0_i32_0 : i32
    scf.if %2 {
      %c0_67 = arith.constant 0 : index
      %c0_68 = arith.constant 0 : index
      %c0_69 = arith.constant 0 : index
      %156 = vector.load %arg2[%c0_67, %c0_68, %c0_69] : memref<2x32x64xbf16, #tpu.memory_space<vmem>>, vector<2x32x64xbf16>
      %157 = vector.shape_cast %156 : vector<2x32x64xbf16> to vector<64x64xbf16>
      %c0_70 = arith.constant 0 : index
      %c0_71 = arith.constant 0 : index
      %158 = vector.load %arg3[%c0_70, %c0_71] : memref<64x32xbf16, #tpu.memory_space<vmem>>, vector<64x32xbf16>
      %cst_72 = arith.constant dense<0.000000e+00> : vector<64x32xf32>
      %159 = tpu.matmul %157, %158, %cst_72 {dimension_numbers = #tpu.dot_dimension_numbers<[1], [0], [0], [1], [0, 0, 1, 1], [], []>} : vector<64x64xbf16>, vector<64x32xbf16>, vector<64x32xf32> -> vector<64x32xf32>
      %160 = vector.shape_cast %159 : vector<64x32xf32> to vector<2x32x32xf32>
      %c0_73 = arith.constant 0 : index
      %c0_74 = arith.constant 0 : index
      %161 = vector.load %arg4[%c0_73, %c0_74] : memref<32x32xf32, #tpu.memory_space<vmem>>, vector<32x32xf32>
      %162 = vector.shape_cast %161 : vector<32x32xf32> to vector<1x32x32xf32>
      %163 = vector.broadcast %162 : vector<1x32x32xf32> to vector<2x32x32xf32>
      %164 = arith.addf %160, %163 : vector<2x32x32xf32>
      %165 = vector.shape_cast %164 : vector<2x32x32xf32> to vector<64x32xf32>
      %c0_75 = arith.constant 0 : index
      %c0_76 = arith.constant 0 : index
      %166 = vector.load %arg21[%c0_75, %c0_76] : memref<64x32xf32, #tpu.memory_space<vmem>>, vector<64x32xf32>
      tpu.vector_store %arg21[%c0_75, %c0_76], %165 {strides = array<i32>} : memref<64x32xf32, #tpu.memory_space<vmem>>, vector<64x32xf32>,
    } else {
    }
    %c0 = arith.constant 0 : index
    %c0_1 = arith.constant 0 : index
    %3 = vector.load %arg21[%c0, %c0_1] : memref<64x32xf32, #tpu.memory_space<vmem>>, vector<64x32xf32>
    %4 = tpu.iota {dimensions = array<i32: 2>} : vector<1x1x32xi32>
    %c17_i32 = arith.constant 17 : i32
    %5 = vector.broadcast %c17_i32 : i32 to vector<1x1x32xi32>
    %6 = arith.cmpi slt, %4, %5 : vector<1x1x32xi32>
    %cst = arith.constant 0.000000e+00 : f32
    %cst_2 = arith.constant -1.000000e+30 : f32
    %7 = vector.broadcast %cst : f32 to vector<1x1x32xf32>
    %8 = vector.broadcast %cst_2 : f32 to vector<1x1x32xf32>
    %9 = arith.select %6, %7, %8 : vector<1x1x32xi1>, vector<1x1x32xf32>
    %c0_3 = arith.constant 0 : index
    %c0_4 = arith.constant 0 : index
    %c0_5 = arith.constant 0 : index
    %10 = vector.load %arg5[%c0_3, %c0_4, %c0_5] : memref<1x1x32xf32, #tpu.memory_space<vmem>>, vector<1x1x32xf32>
    %11 = vector.shape_cast %10 : vector<1x1x32xf32> to vector<1x32xf32>
    %c0_6 = arith.constant 0 : index
    %c0_7 = arith.constant 0 : index
    %c0_8 = arith.constant 0 : index
    %12 = vector.load %arg6[%c0_6, %c0_7, %c0_8] : memref<1x1x32xf32, #tpu.memory_space<vmem>>, vector<1x1x32xf32>
    %13 = vector.shape_cast %12 : vector<1x1x32xf32> to vector<1x32xf32>
    %cst_9 = arith.constant dense<0.000000e+00> : vector<64xf32>
    %14 = vector.multi_reduction <add>, %3, %cst_9 [1] : vector<64x32xf32> to vector<64xf32>
    %15 = vector.shape_cast %14 : vector<64xf32> to vector<64x1xf32>
    %cst_10 = arith.constant 3.200000e+01 : f32
    %16 = vector.broadcast %cst_10 : f32 to vector<64x1xf32>
    %17 = arith.divf %15, %16 : vector<64x1xf32>
    %18 = vector.broadcast %17 : vector<64x1xf32> to vector<64x32xf32>
    %19 = arith.subf %3, %18 : vector<64x32xf32>
    %20 = arith.mulf %19, %19 : vector<64x32xf32>
    %cst_11 = arith.constant dense<0.000000e+00> : vector<64xf32>
    %21 = vector.multi_reduction <add>, %20, %cst_11 [1] : vector<64x32xf32> to vector<64xf32>
    %22 = vector.shape_cast %21 : vector<64xf32> to vector<64x1xf32>
    %cst_12 = arith.constant 3.200000e+01 : f32
    %23 = vector.broadcast %cst_12 : f32 to vector<64x1xf32>
    %24 = arith.divf %22, %23 : vector<64x1xf32>
    %cst_13 = arith.constant 9.99999974E-6 : f32
    %25 = vector.broadcast %cst_13 : f32 to vector<64x1xf32>
    %26 = arith.addf %24, %25 : vector<64x1xf32>
    %27 = math.rsqrt %26 : vector<64x1xf32>
    %28 = vector.broadcast %27 : vector<64x1xf32> to vector<64x32xf32>
    %29 = arith.mulf %19, %28 : vector<64x32xf32>
    %30 = vector.broadcast %11 : vector<1x32xf32> to vector<64x32xf32>
    %31 = arith.mulf %29, %30 : vector<64x32xf32>
    %32 = vector.broadcast %13 : vector<1x32xf32> to vector<64x32xf32>
    %33 = arith.addf %31, %32 : vector<64x32xf32>
    %34 = arith.truncf %33 : vector<64x32xf32> to vector<64x32xbf16>
    %c0_14 = arith.constant 0 : index
    %c0_15 = arith.constant 0 : index
    %c0_16 = arith.constant 0 : index
    %35 = vector.load %arg7[%c0_14, %c0_15, %c0_16] : memref<1x32x96xbf16, #tpu.memory_space<vmem>>, vector<1x32x96xbf16>
    %36 = vector.shape_cast %35 : vector<1x32x96xbf16> to vector<32x96xbf16>
    %cst_17 = arith.constant dense<0.000000e+00> : vector<64x96xf32>
    %37 = tpu.matmul %34, %36, %cst_17 {dimension_numbers = #tpu.dot_dimension_numbers<[1], [0], [0], [1], [0, 0, 1, 1], [], []>} : vector<64x32xbf16>, vector<32x96xbf16>, vector<64x96xf32> -> vector<64x96xf32>
    %38 = arith.truncf %37 : vector<64x96xf32> to vector<64x96xbf16>
    %39 = vector.extract_strided_slice %38 {offsets = [0, 0], sizes = [64, 16], strides = [1, 1]} : vector<64x96xbf16> to vector<64x16xbf16>
    %40 = vector.shape_cast %39 : vector<64x16xbf16> to vector<2x32x16xbf16>
    %41 = vector.extract_strided_slice %38 {offsets = [0, 32], sizes = [64, 16], strides = [1, 1]} : vector<64x96xbf16> to vector<64x16xbf16>
    %42 = vector.shape_cast %41 : vector<64x16xbf16> to vector<2x32x16xbf16>
    %43 = vector.extract_strided_slice %38 {offsets = [0, 64], sizes = [64, 16], strides = [1, 1]} : vector<64x96xbf16> to vector<64x16xbf16>
    %44 = vector.shape_cast %43 : vector<64x16xbf16> to vector<2x32x16xbf16>
    "tpu.trace_start"() <{level = 10 : i32, message = "bqd,bkd->bqk"}> : () -> ()
    %cst_18 = arith.constant dense<0.000000e+00> : vector<2x32x32xf32>
    %45 = tpu.matmul %40, %42, %cst_18 {dimension_numbers = #tpu.dot_dimension_numbers<[2], [2], [1], [1], [0, 0, 0, 1, 1, 1], [0], [0]>} : vector<2x32x16xbf16>, vector<2x32x16xbf16>, vector<2x32x32xf32> -> vector<2x32x32xf32>
    "tpu.trace_stop"() : () -> ()
    %cst_19 = arith.constant 2.500000e-01 : f32
    %46 = vector.broadcast %cst_19 : f32 to vector<2x32x32xf32>
    %47 = arith.mulf %45, %46 : vector<2x32x32xf32>
    %48 = vector.broadcast %9 : vector<1x1x32xf32> to vector<2x32x32xf32>
    %49 = arith.addf %47, %48 : vector<2x32x32xf32>
    %cst_20 = arith.constant dense<0xFF800000> : vector<2x32xf32>
    %50 = vector.multi_reduction <maximumf>, %49, %cst_20 [2] : vector<2x32x32xf32> to vector<2x32xf32>
    %51 = vector.shape_cast %50 : vector<2x32xf32> to vector<2x32x1xf32>
    %52 = vector.broadcast %51 : vector<2x32x1xf32> to vector<2x32x32xf32>
    %53 = arith.subf %49, %52 : vector<2x32x32xf32>
    %54 = math.exp %53 : vector<2x32x32xf32>
    %cst_21 = arith.constant dense<0.000000e+00> : vector<2x32xf32>
    %55 = vector.multi_reduction <add>, %54, %cst_21 [2] : vector<2x32x32xf32> to vector<2x32xf32>
    %56 = vector.shape_cast %55 : vector<2x32xf32> to vector<2x32x1xf32>
    %57 = tpu.reciprocal %56 {approx = true} : vector<2x32x1xf32> -> vector<2x32x1xf32>
    %58 = vector.broadcast %57 : vector<2x32x1xf32> to vector<2x32x32xf32>
    %59 = arith.mulf %54, %58 : vector<2x32x32xf32>
    %60 = arith.truncf %59 : vector<2x32x32xf32> to vector<2x32x32xbf16>
    "tpu.trace_start"() <{level = 10 : i32, message = "bqk,bkd->bqd"}> : () -> ()
    %cst_22 = arith.constant dense<0.000000e+00> : vector<2x32x16xf32>
    %61 = tpu.matmul %60, %44, %cst_22 {dimension_numbers = #tpu.dot_dimension_numbers<[2], [1], [1], [2], [0, 0, 0, 1, 1, 2], [0], [0]>} : vector<2x32x32xbf16>, vector<2x32x16xbf16>, vector<2x32x16xf32> -> vector<2x32x16xf32>
    "tpu.trace_stop"() : () -> ()
    %62 = arith.truncf %61 : vector<2x32x16xf32> to vector<2x32x16xbf16>
    %63 = vector.shape_cast %62 : vector<2x32x16xbf16> to vector<64x16xbf16>
    %64 = vector.extract_strided_slice %38 {offsets = [0, 16], sizes = [64, 16], strides = [1, 1]} : vector<64x96xbf16> to vector<64x16xbf16>
    %65 = vector.shape_cast %64 : vector<64x16xbf16> to vector<2x32x16xbf16>
    %66 = vector.extract_strided_slice %38 {offsets = [0, 48], sizes = [64, 16], strides = [1, 1]} : vector<64x96xbf16> to vector<64x16xbf16>
    %67 = vector.shape_cast %66 : vector<64x16xbf16> to vector<2x32x16xbf16>
    %68 = vector.extract_strided_slice %38 {offsets = [0, 80], sizes = [64, 16], strides = [1, 1]} : vector<64x96xbf16> to vector<64x16xbf16>
    %69 = vector.shape_cast %68 : vector<64x16xbf16> to vector<2x32x16xbf16>
    "tpu.trace_start"() <{level = 10 : i32, message = "bqd,bkd->bqk"}> : () -> ()
    %cst_23 = arith.constant dense<0.000000e+00> : vector<2x32x32xf32>
    %70 = tpu.matmul %65, %67, %cst_23 {dimension_numbers = #tpu.dot_dimension_numbers<[2], [2], [1], [1], [0, 0, 0, 1, 1, 1], [0], [0]>} : vector<2x32x16xbf16>, vector<2x32x16xbf16>, vector<2x32x32xf32> -> vector<2x32x32xf32>
    "tpu.trace_stop"() : () -> ()
    %cst_24 = arith.constant 2.500000e-01 : f32
    %71 = vector.broadcast %cst_24 : f32 to vector<2x32x32xf32>
    %72 = arith.mulf %70, %71 : vector<2x32x32xf32>
    %73 = vector.broadcast %9 : vector<1x1x32xf32> to vector<2x32x32xf32>
    %74 = arith.addf %72, %73 : vector<2x32x32xf32>
    %cst_25 = arith.constant dense<0xFF800000> : vector<2x32xf32>
    %75 = vector.multi_reduction <maximumf>, %74, %cst_25 [2] : vector<2x32x32xf32> to vector<2x32xf32>
    %76 = vector.shape_cast %75 : vector<2x32xf32> to vector<2x32x1xf32>
    %77 = vector.broadcast %76 : vector<2x32x1xf32> to vector<2x32x32xf32>
    %78 = arith.subf %74, %77 : vector<2x32x32xf32>
    %79 = math.exp %78 : vector<2x32x32xf32>
    %cst_26 = arith.constant dense<0.000000e+00> : vector<2x32xf32>
    %80 = vector.multi_reduction <add>, %79, %cst_26 [2] : vector<2x32x32xf32> to vector<2x32xf32>
    %81 = vector.shape_cast %80 : vector<2x32xf32> to vector<2x32x1xf32>
    %82 = tpu.reciprocal %81 {approx = true} : vector<2x32x1xf32> -> vector<2x32x1xf32>
    %83 = vector.broadcast %82 : vector<2x32x1xf32> to vector<2x32x32xf32>
    %84 = arith.mulf %79, %83 : vector<2x32x32xf32>
    %85 = arith.truncf %84 : vector<2x32x32xf32> to vector<2x32x32xbf16>
    "tpu.trace_start"() <{level = 10 : i32, message = "bqk,bkd->bqd"}> : () -> ()
    %cst_27 = arith.constant dense<0.000000e+00> : vector<2x32x16xf32>
    %86 = tpu.matmul %85, %69, %cst_27 {dimension_numbers = #tpu.dot_dimension_numbers<[2], [1], [1], [2], [0, 0, 0, 1, 1, 2], [0], [0]>} : vector<2x32x32xbf16>, vector<2x32x16xbf16>, vector<2x32x16xf32> -> vector<2x32x16xf32>
    "tpu.trace_stop"() : () -> ()
    %87 = arith.truncf %86 : vector<2x32x16xf32> to vector<2x32x16xbf16>
    %88 = vector.shape_cast %87 : vector<2x32x16xbf16> to vector<64x16xbf16>
    %89 = tpu.concatenate %63, %88 in 1 : vector<64x16xbf16>, vector<64x16xbf16> -> vector<64x32xbf16>
    %c0_28 = arith.constant 0 : index
    %c0_29 = arith.constant 0 : index
    %c0_30 = arith.constant 0 : index
    %90 = vector.load %arg8[%c0_28, %c0_29, %c0_30] : memref<1x32x32xbf16, #tpu.memory_space<vmem>>, vector<1x32x32xbf16>
    %91 = vector.shape_cast %90 : vector<1x32x32xbf16> to vector<32x32xbf16>
    %cst_31 = arith.constant dense<0.000000e+00> : vector<64x32xf32>
    %92 = tpu.matmul %89, %91, %cst_31 {dimension_numbers = #tpu.dot_dimension_numbers<[1], [0], [0], [1], [0, 0, 1, 1], [], []>} : vector<64x32xbf16>, vector<32x32xbf16>, vector<64x32xf32> -> vector<64x32xf32>
    %c0_32 = arith.constant 0 : index
    %c0_33 = arith.constant 0 : index
    %c0_34 = arith.constant 0 : index
    %93 = vector.load %arg9[%c0_32, %c0_33, %c0_34] : memref<1x1x32xf32, #tpu.memory_space<vmem>>, vector<1x1x32xf32>
    %94 = vector.shape_cast %93 : vector<1x1x32xf32> to vector<1x32xf32>
    %95 = vector.broadcast %94 : vector<1x32xf32> to vector<64x32xf32>
    %96 = arith.addf %92, %95 : vector<64x32xf32>
    %97 = arith.addf %3, %96 : vector<64x32xf32>
    %c0_35 = arith.constant 0 : index
    %c0_36 = arith.constant 0 : index
    %c0_37 = arith.constant 0 : index
    %98 = vector.load %arg10[%c0_35, %c0_36, %c0_37] : memref<1x1x32xf32, #tpu.memory_space<vmem>>, vector<1x1x32xf32>
    %99 = vector.shape_cast %98 : vector<1x1x32xf32> to vector<1x32xf32>
    %c0_38 = arith.constant 0 : index
    %c0_39 = arith.constant 0 : index
    %c0_40 = arith.constant 0 : index
    %100 = vector.load %arg11[%c0_38, %c0_39, %c0_40] : memref<1x1x32xf32, #tpu.memory_space<vmem>>, vector<1x1x32xf32>
    %101 = vector.shape_cast %100 : vector<1x1x32xf32> to vector<1x32xf32>
    %cst_41 = arith.constant dense<0.000000e+00> : vector<64xf32>
    %102 = vector.multi_reduction <add>, %97, %cst_41 [1] : vector<64x32xf32> to vector<64xf32>
    %103 = vector.shape_cast %102 : vector<64xf32> to vector<64x1xf32>
    %cst_42 = arith.constant 3.200000e+01 : f32
    %104 = vector.broadcast %cst_42 : f32 to vector<64x1xf32>
    %105 = arith.divf %103, %104 : vector<64x1xf32>
    %106 = vector.broadcast %105 : vector<64x1xf32> to vector<64x32xf32>
    %107 = arith.subf %97, %106 : vector<64x32xf32>
    %108 = arith.mulf %107, %107 : vector<64x32xf32>
    %cst_43 = arith.constant dense<0.000000e+00> : vector<64xf32>
    %109 = vector.multi_reduction <add>, %108, %cst_43 [1] : vector<64x32xf32> to vector<64xf32>
    %110 = vector.shape_cast %109 : vector<64xf32> to vector<64x1xf32>
    %cst_44 = arith.constant 3.200000e+01 : f32
    %111 = vector.broadcast %cst_44 : f32 to vector<64x1xf32>
    %112 = arith.divf %110, %111 : vector<64x1xf32>
    %cst_45 = arith.constant 9.99999974E-6 : f32
    %113 = vector.broadcast %cst_45 : f32 to vector<64x1xf32>
    %114 = arith.addf %112, %113 : vector<64x1xf32>
    %115 = math.rsqrt %114 : vector<64x1xf32>
    %116 = vector.broadcast %115 : vector<64x1xf32> to vector<64x32xf32>
    %117 = arith.mulf %107, %116 : vector<64x32xf32>
    %118 = vector.broadcast %99 : vector<1x32xf32> to vector<64x32xf32>
    %119 = arith.mulf %117, %118 : vector<64x32xf32>
    %120 = vector.broadcast %101 : vector<1x32xf32> to vector<64x32xf32>
    %121 = arith.addf %119, %120 : vector<64x32xf32>
    %122 = arith.truncf %121 : vector<64x32xf32> to vector<64x32xbf16>
    %c0_46 = arith.constant 0 : index
    %c0_47 = arith.constant 0 : index
    %c0_48 = arith.constant 0 : index
    %123 = vector.load %arg12[%c0_46, %c0_47, %c0_48] : memref<1x32x64xbf16, #tpu.memory_space<vmem>>, vector<1x32x64xbf16>
    %124 = vector.shape_cast %123 : vector<1x32x64xbf16> to vector<32x64xbf16>
    %cst_49 = arith.constant dense<0.000000e+00> : vector<64x64xf32>
    %125 = tpu.matmul %122, %124, %cst_49 {dimension_numbers = #tpu.dot_dimension_numbers<[1], [0], [0], [1], [0, 0, 1, 1], [], []>} : vector<64x32xbf16>, vector<32x64xbf16>, vector<64x64xf32> -> vector<64x64xf32>
    %c0_50 = arith.constant 0 : index
    %c0_51 = arith.constant 0 : index
    %c0_52 = arith.constant 0 : index
    %126 = vector.load %arg13[%c0_50, %c0_51, %c0_52] : memref<1x1x64xf32, #tpu.memory_space<vmem>>, vector<1x1x64xf32>
    %127 = vector.shape_cast %126 : vector<1x1x64xf32> to vector<1x64xf32>
    %128 = vector.broadcast %127 : vector<1x64xf32> to vector<64x64xf32>
    %129 = arith.addf %125, %128 : vector<64x64xf32>
    %130 = arith.mulf %129, %129 : vector<64x64xf32>
    %131 = arith.mulf %129, %130 : vector<64x64xf32>
    %cst_53 = arith.constant 4.471500e-02 : f32
    %132 = vector.broadcast %cst_53 : f32 to vector<64x64xf32>
    %133 = arith.mulf %132, %131 : vector<64x64xf32>
    %134 = arith.addf %129, %133 : vector<64x64xf32>
    %cst_54 = arith.constant 0.797884583 : f32
    %135 = vector.broadcast %cst_54 : f32 to vector<64x64xf32>
    %136 = arith.mulf %135, %134 : vector<64x64xf32>
    %137 = math.tanh %136 : vector<64x64xf32>
    %cst_55 = arith.constant 1.000000e+00 : f32
    %138 = vector.broadcast %cst_55 : f32 to vector<64x64xf32>
    %139 = arith.addf %138, %137 : vector<64x64xf32>
    %cst_56 = arith.constant 5.000000e-01 : f32
    %140 = vector.broadcast %cst_56 : f32 to vector<64x64xf32>
    %141 = arith.mulf %140, %139 : vector<64x64xf32>
    %142 = arith.mulf %129, %141 : vector<64x64xf32>
    %143 = arith.truncf %142 : vector<64x64xf32> to vector<64x64xbf16>
    %c0_57 = arith.constant 0 : index
    %c0_58 = arith.constant 0 : index
    %c0_59 = arith.constant 0 : index
    %144 = vector.load %arg14[%c0_57, %c0_58, %c0_59] : memref<1x64x32xbf16, #tpu.memory_space<vmem>>, vector<1x64x32xbf16>
    %145 = vector.shape_cast %144 : vector<1x64x32xbf16> to vector<64x32xbf16>
    %cst_60 = arith.constant dense<0.000000e+00> : vector<64x32xf32>
    %146 = tpu.matmul %143, %145, %cst_60 {dimension_numbers = #tpu.dot_dimension_numbers<[1], [0], [0], [1], [0, 0, 1, 1], [], []>} : vector<64x64xbf16>, vector<64x32xbf16>, vector<64x32xf32> -> vector<64x32xf32>
    %147 = arith.addf %97, %146 : vector<64x32xf32>
    %c0_61 = arith.constant 0 : index
    %c0_62 = arith.constant 0 : index
    %c0_63 = arith.constant 0 : index
    %148 = vector.load %arg15[%c0_61, %c0_62, %c0_63] : memref<1x1x32xf32, #tpu.memory_space<vmem>>, vector<1x1x32xf32>
    %149 = vector.shape_cast %148 : vector<1x1x32xf32> to vector<1x32xf32>
    %150 = vector.broadcast %149 : vector<1x32xf32> to vector<64x32xf32>
    %151 = arith.addf %147, %150 : vector<64x32xf32>
    %c0_64 = arith.constant 0 : index
    %c0_65 = arith.constant 0 : index
    %152 = vector.load %arg21[%c0_64, %c0_65] : memref<64x32xf32, #tpu.memory_space<vmem>>, vector<64x32xf32>
    tpu.vector_store %arg21[%c0_64, %c0_65], %151 {strides = array<i32>} : memref<64x32xf32, #tpu.memory_space<vmem>>, vector<64x32xf32>,
    %c1_i32 = arith.constant 1 : i32
    %153 = arith.cmpi eq, %arg1, %c1_i32 : i32
    %154 = arith.extui %153 : i1 to i32
    %c0_i32_66 = arith.constant 0 : i32
    %155 = arith.cmpi ne, %154, %c0_i32_66 : i32
    scf.if %155 {
      %156 = vector.shape_cast %151 : vector<64x32xf32> to vector<2x32x32xf32>
      %157 = vector.extract_strided_slice %156 {offsets = [0, 0, 0], sizes = [2, 1, 32], strides = [1, 1, 1]} : vector<2x32x32xf32> to vector<2x1x32xf32>
      %158 = vector.shape_cast %157 : vector<2x1x32xf32> to vector<2x32xf32>
      %c0_67 = arith.constant 0 : index
      %c0_68 = arith.constant 0 : index
      %159 = vector.load %arg16[%c0_67, %c0_68] : memref<1x32xf32, #tpu.memory_space<vmem>>, vector<1x32xf32>
      %c0_69 = arith.constant 0 : index
      %c0_70 = arith.constant 0 : index
      %160 = vector.load %arg17[%c0_69, %c0_70] : memref<1x32xf32, #tpu.memory_space<vmem>>, vector<1x32xf32>
      %cst_71 = arith.constant dense<0.000000e+00> : vector<2xf32>
      %161 = vector.multi_reduction <add>, %158, %cst_71 [1] : vector<2x32xf32> to vector<2xf32>
      %162 = vector.shape_cast %161 : vector<2xf32> to vector<2x1xf32>
      %cst_72 = arith.constant 3.200000e+01 : f32
      %163 = vector.broadcast %cst_72 : f32 to vector<2x1xf32>
      %164 = arith.divf %162, %163 : vector<2x1xf32>
      %165 = vector.broadcast %164 : vector<2x1xf32> to vector<2x32xf32>
      %166 = arith.subf %158, %165 : vector<2x32xf32>
      %167 = arith.mulf %166, %166 : vector<2x32xf32>
      %cst_73 = arith.constant dense<0.000000e+00> : vector<2xf32>
      %168 = vector.multi_reduction <add>, %167, %cst_73 [1] : vector<2x32xf32> to vector<2xf32>
      %169 = vector.shape_cast %168 : vector<2xf32> to vector<2x1xf32>
      %cst_74 = arith.constant 3.200000e+01 : f32
      %170 = vector.broadcast %cst_74 : f32 to vector<2x1xf32>
      %171 = arith.divf %169, %170 : vector<2x1xf32>
      %cst_75 = arith.constant 9.99999974E-6 : f32
      %172 = vector.broadcast %cst_75 : f32 to vector<2x1xf32>
      %173 = arith.addf %171, %172 : vector<2x1xf32>
      %174 = math.rsqrt %173 : vector<2x1xf32>
      %175 = vector.broadcast %174 : vector<2x1xf32> to vector<2x32xf32>
      %176 = arith.mulf %166, %175 : vector<2x32xf32>
      %177 = vector.broadcast %159 : vector<1x32xf32> to vector<2x32xf32>
      %178 = arith.mulf %176, %177 : vector<2x32xf32>
      %179 = vector.broadcast %160 : vector<1x32xf32> to vector<2x32xf32>
      %180 = arith.addf %178, %179 : vector<2x32xf32>
      %181 = arith.truncf %180 : vector<2x32xf32> to vector<2x32xbf16>
      %c0_76 = arith.constant 0 : index
      %c0_77 = arith.constant 0 : index
      %182 = vector.load %arg18[%c0_76, %c0_77] : memref<32x128xbf16, #tpu.memory_space<vmem>>, vector<32x128xbf16>
      %cst_78 = arith.constant dense<0.000000e+00> : vector<2x128xf32>
      %183 = tpu.matmul %181, %182, %cst_78 {dimension_numbers = #tpu.dot_dimension_numbers<[1], [0], [0], [1], [0, 0, 1, 1], [], []>} : vector<2x32xbf16>, vector<32x128xbf16>, vector<2x128xf32> -> vector<2x128xf32>
      %c0_79 = arith.constant 0 : index
      %c0_80 = arith.constant 0 : index
      %184 = vector.load %arg19[%c0_79, %c0_80] : memref<1x128xf32, #tpu.memory_space<vmem>>, vector<1x128xf32>
      %185 = vector.broadcast %184 : vector<1x128xf32> to vector<2x128xf32>
      %186 = arith.addf %183, %185 : vector<2x128xf32>
      %c0_81 = arith.constant 0 : index
      %c0_82 = arith.constant 0 : index
      %187 = vector.load %arg20[%c0_81, %c0_82] : memref<2x128xf32, #tpu.memory_space<vmem>>, vector<2x128xf32>
      tpu.vector_store %arg20[%c0_81, %c0_82], %186 {strides = array<i32>} : memref<2x128xf32, #tpu.memory_space<vmem>>, vector<2x128xf32>,
    } else {
    }
    return
  }
  func.func @transform_0(%arg0: i32, %arg1: i32) -> (i32, i32, i32) {
    %c0_i32 = arith.constant 0 : i32
    %c0_i32_0 = arith.constant 0 : i32
    %c0_i32_1 = arith.constant 0 : i32
    return %arg0, %c0_i32, %c0_i32_0 : i32, i32, i32
  }
  func.func @transform_1(%arg0: i32, %arg1: i32) -> (i32, i32) {
    %c0_i32 = arith.constant 0 : i32
    %c0_i32_0 = arith.constant 0 : i32
    %c0_i32_1 = arith.constant 0 : i32
    return %c0_i32, %c0_i32_0 : i32, i32
  }
  func.func @transform_2(%arg0: i32, %arg1: i32) -> (i32, i32) {
    %c0_i32 = arith.constant 0 : i32
    %c0_i32_0 = arith.constant 0 : i32
    %c0_i32_1 = arith.constant 0 : i32
    return %c0_i32, %c0_i32_0 : i32, i32
  }
  func.func @transform_3(%arg0: i32, %arg1: i32) -> (i32, i32, i32) {
    %c0_i32 = arith.constant 0 : i32
    %c0_i32_0 = arith.constant 0 : i32
    %c0_i32_1 = arith.constant 0 : i32
    return %arg1, %c0_i32, %c0_i32_0 : i32, i32, i32
  }
  func.func @transform_4(%arg0: i32, %arg1: i32) -> (i32, i32, i32) {
    %c0_i32 = arith.constant 0 : i32
    %c0_i32_0 = arith.constant 0 : i32
    %c0_i32_1 = arith.constant 0 : i32
    return %arg1, %c0_i32, %c0_i32_0 : i32, i32, i32
  }
  func.func @transform_5(%arg0: i32, %arg1: i32) -> (i32, i32, i32) {
    %c0_i32 = arith.constant 0 : i32
    %c0_i32_0 = arith.constant 0 : i32
    %c0_i32_1 = arith.constant 0 : i32
    return %arg1, %c0_i32, %c0_i32_0 : i32, i32, i32
  }
  func.func @transform_6(%arg0: i32, %arg1: i32) -> (i32, i32, i32) {
    %c0_i32 = arith.constant 0 : i32
    %c0_i32_0 = arith.constant 0 : i32
    %c0_i32_1 = arith.constant 0 : i32
    return %arg1, %c0_i32, %c0_i32_0 : i32, i32, i32
  }
  func.func @transform_7(%arg0: i32, %arg1: i32) -> (i32, i32, i32) {
    %c0_i32 = arith.constant 0 : i32
    %c0_i32_0 = arith.constant 0 : i32
    %c0_i32_1 = arith.constant 0 : i32
    return %arg1, %c0_i32, %c0_i32_0 : i32, i32, i32
  }
  func.func @transform_8(%arg0: i32, %arg1: i32) -> (i32, i32, i32) {
    %c0_i32 = arith.constant 0 : i32
    %c0_i32_0 = arith.constant 0 : i32
    %c0_i32_1 = arith.constant 0 : i32
    return %arg1, %c0_i32, %c0_i32_0 : i32, i32, i32
  }
  func.func @transform_9(%arg0: i32, %arg1: i32) -> (i32, i32, i32) {
    %c0_i32 = arith.constant 0 : i32
    %c0_i32_0 = arith.constant 0 : i32
    %c0_i32_1 = arith.constant 0 : i32
    return %arg1, %c0_i32, %c0_i32_0 : i32, i32, i32
  }
  func.func @transform_10(%arg0: i32, %arg1: i32) -> (i32, i32, i32) {
    %c0_i32 = arith.constant 0 : i32
    %c0_i32_0 = arith.constant 0 : i32
    %c0_i32_1 = arith.constant 0 : i32
    return %arg1, %c0_i32, %c0_i32_0 : i32, i32, i32
  }
  func.func @transform_11(%arg0: i32, %arg1: i32) -> (i32, i32, i32) {
    %c0_i32 = arith.constant 0 : i32
    %c0_i32_0 = arith.constant 0 : i32
    %c0_i32_1 = arith.constant 0 : i32
    return %arg1, %c0_i32, %c0_i32_0 : i32, i32, i32
  }
  func.func @transform_12(%arg0: i32, %arg1: i32) -> (i32, i32, i32) {
    %c0_i32 = arith.constant 0 : i32
    %c0_i32_0 = arith.constant 0 : i32
    %c0_i32_1 = arith.constant 0 : i32
    return %arg1, %c0_i32, %c0_i32_0 : i32, i32, i32
  }
  func.func @transform_13(%arg0: i32, %arg1: i32) -> (i32, i32, i32) {
    %c0_i32 = arith.constant 0 : i32
    %c0_i32_0 = arith.constant 0 : i32
    %c0_i32_1 = arith.constant 0 : i32
    return %arg1, %c0_i32, %c0_i32_0 : i32, i32, i32
  }
  func.func @transform_14(%arg0: i32, %arg1: i32) -> (i32, i32) {
    %c0_i32 = arith.constant 0 : i32
    %c0_i32_0 = arith.constant 0 : i32
    %c0_i32_1 = arith.constant 0 : i32
    return %c0_i32, %c0_i32_0 : i32, i32
  }
  func.func @transform_15(%arg0: i32, %arg1: i32) -> (i32, i32) {
    %c0_i32 = arith.constant 0 : i32
    %c0_i32_0 = arith.constant 0 : i32
    %c0_i32_1 = arith.constant 0 : i32
    return %c0_i32, %c0_i32_0 : i32, i32
  }
  func.func @transform_16(%arg0: i32, %arg1: i32) -> (i32, i32) {
    %c0_i32 = arith.constant 0 : i32
    %c0_i32_0 = arith.constant 0 : i32
    %c0_i32_1 = arith.constant 0 : i32
    return %c0_i32, %c0_i32_0 : i32, i32
  }
  func.func @transform_17(%arg0: i32, %arg1: i32) -> (i32, i32) {
    %c0_i32 = arith.constant 0 : i32
    %c0_i32_0 = arith.constant 0 : i32
    %c0_i32_1 = arith.constant 0 : i32
    return %c0_i32, %c0_i32_0 : i32, i32
  }
  func.func @transform_18(%arg0: i32, %arg1: i32) -> (i32, i32) {
    %c0_i32 = arith.constant 0 : i32
    %c0_i32_0 = arith.constant 0 : i32
    return %arg0, %c0_i32 : i32, i32
  }
}

</mosaic_0001>

<bundles_post_ra>
// kernel: tpu_custom_call.1
= control target key start
LH: loop header
LB: loop body
LE: loop exit
PB: predicated region body
PF: predicated region fallthrough
CT: control target
= control target key end

     0   :  { %s4262_s0 = inlined_call_operand.vmem [shape: bf16[2,32,64], index: 0, kind: input, shape index: {}]   ;;  %s4263_s1 = inlined_call_operand.vmem [shape: bf16[64,32], index: 1, kind: input, shape index: {}]   ;;  %s4264_s2 = inlined_call_operand.vmem [shape: f32[32,32], index: 2, kind: input, shape index: {}]   ;;  %s4265_s3 = inlined_call_operand.vmem [shape: f32[2,1,32], index: 3, kind: input, shape index: {}]   ;;  %s4266_s4 = inlined_call_operand.vmem [shape: f32[2,1,32], index: 4, kind: input, shape index: {}]   ;;  %s4267_s5 = inlined_call_operand.vmem [shape: bf16[2,32,96], index: 5, kind: input, shape index: {}]   ;;  %s4268_s6 = inlined_call_operand.hbm [shape: bf16[2,32,32], index: 6, kind: input, shape index: {}]   ;;  %s4269_s7 = inlined_call_operand.vmem [shape: f32[2,1,32], index: 7, kind: input, shape index: {}]   ;;  %s4270_s8 = inlined_call_operand.vmem [shape: f32[2,1,32], index: 8, kind: input, shape index: {}]   ;;  %s4271_s9 = inlined_call_operand.vmem [shape: f32[2,1,32], index: 9, kind: input, shape index: {}]   ;;  %s4272_s10 = inlined_call_operand.hbm [shape: bf16[2,32,64], index: 10, kind: input, shape index: {}]   ;;  %s4273_s11 = inlined_call_operand.hbm [shape: f32[2,1,64], index: 11, kind: input, shape index: {}]   ;;  %s4274_s12 = inlined_call_operand.vmem [shape: bf16[2,64,32], index: 12, kind: input, shape index: {}]   ;;  %s4275_s13 = inlined_call_operand.hbm [shape: f32[2,1,32], index: 13, kind: input, shape index: {}]   ;;  %s4276_s14 = inlined_call_operand.vmem [shape: f32[1,32], index: 14, kind: input, shape index: {}]   ;;  %s4277_s15 = inlined_call_operand.vmem [shape: f32[1,32], index: 15, kind: input, shape index: {}]   ;;  %s4278_s16 = inlined_call_operand.vmem [shape: bf16[32,128], index: 16, kind: input, shape index: {}]   ;;  %s4279_s17 = inlined_call_operand.vmem [shape: f32[1,128], index: 17, kind: input, shape index: {}]   ;;  %s4280_s18 = inlined_call_operand.hbm [shape: f32[2,128], index: 18, kind: output, shape index: {}]  }
   0x1   :  { %4289 = sst [smem:[#allocation21_spill]] %s4262_s0 }
   0x2   :  { %4290 = sst [smem:[#allocation22_spill]] %s4263_s1 }
   0x3   :  { %4291 = sst [smem:[#allocation23_spill]] %s4264_s2 }
   0x4   :  { %4292 = sst [smem:[#allocation24_spill]] %s4267_s5 }
   0x5   :  { %4293 = sst [smem:[#allocation25_spill]] %s4268_s6 }
   0x6   :  { %4294 = sst [smem:[#allocation26_spill]] %s4270_s8 }
   0x7   :  { %4295 = sst [smem:[#allocation27_spill]] %s4271_s9 }
   0x8   :  { %4296 = sst [smem:[#allocation28_spill]] %s4272_s10 }
   0x9   :  { %4297 = sst [smem:[#allocation29_spill]] %s4273_s11 }
   0xa   :  { %4298 = sst [smem:[#allocation30_spill]] %s4274_s12 }
   0xb   :  { %4299 = sst [smem:[#allocation31_spill]] %s4275_s13 }
   0xc   :  { %4300 = sst [smem:[#allocation32_spill]] %s4276_s14 }
   0xd   :  { %4301 = sst [smem:[#allocation33_spill]] %s4277_s15 }
   0xe   :  { %4302 = sst [smem:[#allocation34_spill]] %s4278_s16 }
   0xf   :  { %4303 = sst [smem:[#allocation35_spill]] %s4279_s17 }
  0x10   :  { %4304 = sst [smem:[#allocation36_spill]] %s4280_s18 }
  0x11   :  { %23 = vsyncpa [#allocation4], 0 }
  0x12   :  { %25 = vsyncpa [#allocation4 + $0x1], 0 }
  0x13   :  { %26 = vsyncpa [#allocation7], 0 }
  0x14   :  { %28 = vsyncpa [#allocation7 + $0x1], 0 }
  0x15   :  { %29 = vsyncpa [#allocation10], 0 }
  0x16   :  { %31 = vsyncpa [#allocation10 + $0x1], 0 }
  0x17   :  { %32 = vsyncpa [#allocation5], 0  ;;  %s3439_s27 = smov 0   ;;  %s3441_s28 = smov 0  }
  0x18   :  { %s3443_s29 = smov 0   ;;  %s3445_s30 = smov 0  }
  0x19   :  { %s3447_s0 = smov 0   ;;  %s3449_s19 = smov 0  }
  0x1a LB: > { %4305 = sst [smem:[#allocation16_spill]] %s3319_s29  ;;  %s3468_s1 = sadd.s32 4294967295, %s3331_s19   ;;  %s3331_s19 = sphi %s3449_s19, %s38_s19   ;;  %s3327_s0 = sphi %s3447_s0, %s4340_s0   ;;  %s3323_s30 = sphi %s3445_s30, %s4339_s30   ;;  %s3319_s29 = sphi %s3443_s29, %s4338_s29   ;;  %s3315_s28 = sphi %s3441_s28, %s4342_s28   ;;  %s3311_s27 = sphi %s3439_s27, %s4341_s27  }
  0x1b   : > { %4306 = sst [smem:[#allocation17_spill]] %s3327_s0  ;;  %s47_s20 = sadd.s32 1, %s3327_s0 }
  0x1c   : > { %4307 = sst [smem:[#allocation18_spill]] %s3331_s19  ;;  %p48_p0 = scmp.ge.s32.totalorder %s47_s20, 2 }
  0x1d   : > { %s203_s21 = sadd.s32 1, %s3319_s29  ;;  %p210_p1 = scmp.ne.s32.totalorder %s3319_s29, %s3315_s28 }
  0x1e   : > { %p211_p2 = scmp.eq.s32.totalorder %s3331_s19, 0  ;;  %s4344_s20 = smov (%p48_p0, %s47_s20), 0 }
  0x1f   : > { %4308 = sst [smem:[#allocation19_spill]] %s4344_s20  ;;  %p216_p4 = scmp.ne.s32.totalorder %s3315_s28, %s3311_s27 }
  0x20   : > { %p212_p3 = por %p211_p2, %p210_p1  ;;  %s200_s22 = ssub.s32 %s3327_s0, %s4344_s20 }
  0x21   : > { %p217_p5 = scmp.eq.s32.totalorder %s3468_s1, 0  ;;  %p201_p6 = scmp.eq.s32.totalorder %s200_s22, 0 }
  0x22   : > { %p2925_p8 = scmp.lt.s32.totalorder %s3331_s19, 2  ;;  %s3490_s24 = sand.u32 1, %s3319_s29  }
  0x23   : > { %p3481_p7 = por %p217_p5, %p216_p4  ;;  %s2864_s25 = sshll.u32 %s3327_s0, 4 }
  0x24   : > { %s3487_s23 = scalar_select %p201_p6, %s3319_s29, %s203_s21  }
  0x25   : > { %s2728_s26 = sshll.u32 %s3490_s24, 4  ;;  %p3494_p9 = pnand %p2925_p8, %p212_p3 }
  0x26   : > { %4310 = sst [smem:[#allocation20_spill]] %s3487_s23  ;;  %s620_s27 = sand.u32 1, %s3331_s19  }
  0x27   : > { %s4312_s10 = sld [smem:[#allocation28_spill]]  ;;  %s624_s15 = scalar_lea.vmem [#allocation6], %s2728_s26 }
  0x28   : > { %s632_s14 = sshll.u32 %s624_s15, 4  ;;  %p2734_p10 = scmp.ge.s32.totalorder %s3331_s19, 1  ;;  %s633_s14 = int_to_ptr.vmem [resolvable:$true] %s632_s14 }
  0x29   : > { %s621_s23 = scalar_lea.sflag [#allocation7], %s620_s27  ;;  %s3333_s29 = smov 64  }
  0x2a   : > { %s3334_s16 = smov 4   ;;  %p682_p11 = scmp.lt.s32.totalorder %s3331_s19, 3 }
  0x2b   : > { %s4314_s6 = sld [smem:[#allocation25_spill]]  ;;  %s581_s27 = scalar_lea.sflag [#allocation4], %s3490_s24 }
  0x2c   : > { %p3506_p12 = pnand %p2734_p10, %p682_p11  ;;  %s4315_s11 = sld [smem:[#allocation29_spill]] }
  0x2d   : > { %s629_s17 = scalar_lea.hbm %s4312_s10, %s2864_s25  ;;  %s584_s10 = scalar_lea.vmem [#allocation3], %s2728_s26 }
  0x2e   : > { %s630_s21 = sshll.u32 %s629_s17, 4  ;;  %s592_s12 = sshll.u32 %s584_s10, 4  ;;  %s631_s21 = int_to_ptr.hbm [resolvable:$true] %s630_s21  ;;  %s593_s12 = int_to_ptr.vmem [resolvable:$true] %s592_s12 }
  0x2f   : > { %2918 = dma.hbm_to_vmem [thread:$0]  (!%p3494_p9), %s631_s21, 256, %s633_s14, %s621_s23, %s3333_s29, %s3333_s29, %s3334_s16  }
  0x30   : > { %s645_s8 = scalar_lea.vmem [#allocation8], %s3490_s24  ;;  %s4316_s13 = sld [smem:[#allocation31_spill]] }
  0x31   : > { %s589_s22 = scalar_lea.hbm %s4314_s6, %s2864_s25  ;;  %s652_s5 = sshll.u32 %s645_s8, 4  ;;  %s653_s5 = int_to_ptr.vmem [resolvable:$true] %s652_s5 }
  0x32   : > { %s590_s9 = sshll.u32 %s589_s22, 4  ;;  %s648_s19 = scalar_lea.hbm %s4315_s11, %s3327_s0  ;;  %s591_s9 = int_to_ptr.hbm [resolvable:$true] %s590_s9 }
  0x33   : > { %2915 = dma.hbm_to_vmem [thread:$0]  (!%p3494_p9), %s591_s9, 256, %s593_s12, %s581_s27, %s3333_s29, %s3333_s29, %s3334_s16  }
  0x34   : > { %s650_s15 = sshll.u32 %s648_s19, 4  ;;  %s670_s22 = scalar_lea.vmem [#allocation9], %s3490_s24  ;;  %s651_s15 = int_to_ptr.hbm [resolvable:$true] %s650_s15 }
  0x35   : > { %2921 = dma.hbm_to_vmem [thread:$0]  (!%p3494_p9), %s651_s15, 16, %s653_s5, %s621_s23  }
  0x36   : > { %s673_s26 = scalar_lea.hbm %s4316_s13, %s3327_s0  ;;  %s677_s6 = sshll.u32 %s670_s22, 4  ;;  %s678_s6 = int_to_ptr.vmem [resolvable:$true] %s677_s6 }
  0x37   : > { %s675_s17 = sshll.u32 %s673_s26, 4  ;;  %s668_s9 = scalar_lea.sflag [#allocation10], %s3490_s24  ;;  %s676_s17 = int_to_ptr.hbm [resolvable:$true] %s675_s17 }
  0x38   : > { %2924 = dma.hbm_to_vmem [thread:$0]  (!%p3494_p9), %s676_s17, 16, %s678_s6, %s668_s9  }
  0x39   : > { %686 = sbr.rel (%p3506_p12) target bundleno = 2881 (0xb41), region = 92  ;;  %s3534_s8 = sand.u32 (!%p3506_p12), 1, %s3315_s28  }
  0x3a   : > { %s2735_s5 = sshll.u32 (!%p3506_p12), %s3534_s8, 4  ;;  %s689_s12 = scalar_lea.sflag (!%p3506_p12), [#allocation4], %s3534_s8 }
  0x3b   : > { %s3538_s16 = scalar_lea.vmem (!%p3506_p12), [#allocation3], %s2735_s5 }
  0x3e   : > { %3294 = dma.done.wait (%p3481_p7), %s689_s12, 256  }
  0x3f   : > { %3296 = vsyncadd (%p3481_p7), %s689_s12, 4294967040  ;;  %s698_s6 = sand.u32 1, %s3468_s1   ;;  %s3545_s29 = scalar_lea.vmem [#allocation6], %s2735_s5 }
  0x40   : > { %s699_s18 = scalar_lea.sflag [#allocation7], %s698_s6 }
  0x41   : > { %3298 = dma.done.wait (%p3481_p7), %s699_s18, 272  }
  0x42   : > { %3300 = vsyncadd (%p3481_p7), %s699_s18, 4294967024  ;;  %s718_s23 = scalar_lea.sflag [#allocation10], %s3534_s8 }
  0x43   : > { %3302 = dma.done.wait (%p3481_p7), %s718_s23, 16  }
  0x44   : > { %3304 = vsyncadd (%p3481_p7), %s718_s23, 4294967280  ;;  %p820_p13 = scmp.lt.s32.totalorder %s3323_s30, 1  ;;  %s4317_s12 = sld [smem:[#allocation24_spill]] }
  0x45   : > { %s4318_s27 = sld [smem:[#allocation26_spill]]  ;;  %p2741_p0 = scmp.ne.s32.totalorder %s3323_s30, 0 }
  0x46   : > { %s3560_s20 = scalar_select %p820_p13, %s3323_s30, 1 }
  0x47   : > { %s4319_s21 = sld [smem:[#allocation27_spill]] }
  0x48   : > { %s2866_s25 = sshll.u32 %s3560_s20, 4  ;;  %s833_s22 = scalar_lea.vmem %s4269_s7, %s3560_s20 }
  0x49   : > { %s2867_s15 = sshll.u32 %s3560_s20, 5  ;;  %s4320_s13 = sld [smem:[#allocation30_spill]] }
  0x4a   : > { %s3578_s6 = scalar_lea.vmem %s4317_s12, %s2866_s25  ;;  %s4321_s17 = sld [smem:[#allocation22_spill]] (!%p2741_p0) }
  0x4b   : > { %s836_s14 = scalar_lea.vmem %s4318_s27, %s3560_s20  ;;  %849 = sbr.rel (%p2741_p0) target bundleno = 241 (0xf1), region = 112 }
  0x4c   : > { %s4322_s18 = sld [smem:[#allocation21_spill]] (!%p2741_p0) }
  0x4d   : > { %s839_s11 = scalar_lea.vmem %s4319_s21, %s3560_s20  ;;  %s4323_s19 = sld [smem:[#allocation23_spill]] (!%p2741_p0) }
  0x4f   : > { %s3592_s0 = scalar_lea.vmem %s4320_s13, %s2867_s15 }
  0x50   : > { %v2875_v0 = vld [vmem:[%s4321_s17 + $0x18] sm:$0xff]  ;;  %v2874_v1 = vld [vmem:[%s4321_s17 + $0x10] sm:$0xff]  ;;  %v2873_v2 = vld [vmem:[%s4321_s17 + $0x8] sm:$0xff]  ;;  %vm910_vm0 = vcmask 523264   ;;  %vm964_vm1 = vcmask 261120  }
  0x51   : > { %927 = vmatpush.bf16.msra.mxu0 %v2875_v0  ;;  %2888 = vmatpush.bf16.msra.mxu1 %v2875_v0  ;;  %v2872_v3 = vld [vmem:[%s4321_s17] sm:$0xff] }
  0x52   : > { %2889 = vmatpush.bf16.msra.mxu2 %v2875_v0  ;;  %2890 = vmatpush.bf16.msra.mxu3 %v2875_v0  ;;  %v2868_v4 = vld [vmem:[%s4322_s18] sm:$0xff]  ;;  %v2869_v5 = vld [vmem:[%s4322_s18 + $0x8] sm:$0xff]  ;;  %v2870_v6 = vld [vmem:[%s4322_s18 + $0x10] sm:$0xff] }
  0x53   : > { %v2871_v7 = vld [vmem:[%s4322_s18 + $0x18] sm:$0xff]  ;;  %s4324_s13 = smov %s4323_s19  ;;  %v952_v8 = vld [vmem:[%s4323_s19] sm:$0xff] }
  0x54   : > { %v954_v9 = vld [vmem:[%s4324_s13 + $0x10] sm:$0xff]  ;;  %v953_v14 = vld [vmem:[%s4324_s13 + $0x8] sm:$0xff]  ;;  %v955_v15 = vld [vmem:[%s4324_s13 + $0x18] sm:$0xff] }
  0x55   : > { %928 = vmatpush.bf16.msra.mxu0 %v2874_v1  ;;  %2891 = vmatpush.bf16.msra.mxu1 %v2874_v1 }
  0x56   : > { %2892 = vmatpush.bf16.msra.mxu2 %v2874_v1  ;;  %2893 = vmatpush.bf16.msra.mxu3 %v2874_v1 }
  0x59   : > { %929 = vmatpush.bf16.msra.mxu0 %v2873_v2  ;;  %2894 = vmatpush.bf16.msra.mxu1 %v2873_v2 }
  0x5a   : > { %2895 = vmatpush.bf16.msra.mxu2 %v2873_v2  ;;  %2896 = vmatpush.bf16.msra.mxu3 %v2873_v2 }
  0x5d   : > { %930 = vmatpush.bf16.msra.mxu0 %v2872_v3  ;;  %2897 = vmatpush.bf16.msra.mxu1 %v2872_v3 }
  0x5e   : > { %2898 = vmatpush.bf16.msra.mxu2 %v2872_v3  ;;  %2899 = vmatpush.bf16.msra.mxu3 %v2872_v3 }
  0x60   : > { %2774 = vmatmul.msk.bf16.vlgmr.msra.gmra.mxu0 %vm910_vm0, %v2868_v4  ;;  %2775 = vmatmul.msk.bf16.vlgmr.msra.gmra.mxu1 %vm910_vm0, %v2869_v5 }
  0x61   : > { %2776 = vmatmul.msk.bf16.vlgmr.msra.gmra.mxu2 %vm910_vm0, %v2870_v6  ;;  %2777 = vmatmul.msk.bf16.vlgmr.msra.gmra.mxu3 %vm910_vm0, %v2871_v7 }
  0xdd   : > { %v932_v10 = vpop.f32.mrf.mxu0  ;;  %v937_v11 = vpop.f32.mrf.mxu1 }
  0xde   : > { %v956_v12 = vadd.f32 %v952_v8, %v932_v10  ;;  %v958_v13 = vadd.f32 %v954_v9, %v937_v11 }
  0xe0   : > { %965 = vst.msk [vmem:[#allocation2] sm:$0xff] %vm964_vm1, %v956_v12 }
  0xe1   : > { %967 = vst.msk [vmem:[#allocation2 + $0x10] sm:$0xff] %vm964_vm1, %v958_v13 }
  0xe4   : > { %v942_v16 = vpop.f32.mrf.mxu2  ;;  %v947_v17 = vpop.f32.mrf.mxu3 }
  0xe5   : > { %v960_v18 = vadd.f32 %v952_v8, %v942_v16  ;;  %v962_v19 = vadd.f32 %v954_v9, %v947_v17  ;;  %v934_v20 = vpop.f32.mrf.mxu0  ;;  %v939_v21 = vpop.f32.mrf.mxu1 }
  0xe6   : > { %v957_v22 = vadd.f32 %v953_v14, %v934_v20  ;;  %v959_v23 = vadd.f32 %v955_v15, %v939_v21 }
  0xe7   : > { %969 = vst.msk [vmem:[#allocation2 + $0x20] sm:$0xff] %vm964_vm1, %v960_v18 }
  0xe8   : > { %971 = vst.msk [vmem:[#allocation2 + $0x30] sm:$0xff] %vm964_vm1, %v962_v19 }
  0xe9   : > { %966 = vst.msk [vmem:[#allocation2 + $0x8] sm:$0xff] %vm964_vm1, %v957_v22 }
  0xea   : > { %968 = vst.msk [vmem:[#allocation2 + $0x18] sm:$0xff] %vm964_vm1, %v959_v23 }
  0xec   : > { %v944_v24 = vpop.f32.mrf.mxu2  ;;  %v949_v25 = vpop.f32.mrf.mxu3 }
  0xed   : > { %v961_v26 = vadd.f32 %v953_v14, %v944_v24  ;;  %v963_v27 = vadd.f32 %v955_v15, %v949_v25 }
  0xef   : > { %970 = vst.msk [vmem:[#allocation2 + $0x28] sm:$0xff] %vm964_vm1, %v961_v26 }
  0xf0   : > { %972 = vst.msk [vmem:[#allocation2 + $0x38] sm:$0xff] %vm964_vm1, %v963_v27 }
  0xf1 PF: > { %v977_v28 = vld [vmem:[#allocation2 + $0x20] sm:$0xff]  ;;  %vm987_vm2 = vcmask 261120   ;;  %v975_v29 = vld [vmem:[#allocation2 + $0x10] sm:$0xff]  ;;  %v976_v35 = vld [vmem:[#allocation2 + $0x18] sm:$0xff]  ;;  %v3335_v42 = vmov 32.0   ;;  %s4325_s10 = scalar_lea.vmem %s4265_s3, %s3560_s20  ;;  %s4326_s9 = scalar_lea.vmem %s4266_s4, %s3560_s20 }
  0xf2   : > { %v973_v30 = vld [vmem:[#allocation2] sm:$0xff]  ;;  %v1000_v31 = vsel %vm987_vm2, %v977_v28, 0.0  ;;  %v994_v32 = vsel %vm987_vm2, %v975_v29, 0.0  ;;  %v974_v36 = vld [vmem:[#allocation2 + $0x8] sm:$0xff]  ;;  %v997_v38 = vsel %vm987_vm2, %v976_v35, 0.0  ;;  %v979_v40 = vld [vmem:[#allocation2 + $0x30] sm:$0xff]  ;;  %2994 = vrcp.f32 %v3335_v42 }
  0xf3   : > { %v988_v33 = vsel %vm987_vm2, %v973_v30, 0.0  ;;  %1001 = vadd.xlane.f32.xlu2 %v1000_v31  ;;  %995 = vadd.xlane.f32.xlu1 %v994_v32  ;;  %v991_v39 = vsel %vm987_vm2, %v974_v36, 0.0  ;;  %v1006_v41 = vsel %vm987_vm2, %v979_v40, 0.0  ;;  %v2877_v22 = vld [vmem:[%s3578_s6 + $0x8] sm:$0xff]  ;;  %v2876_v26 = vld [vmem:[%s3578_s6] sm:$0xff]  ;;  %s3336_s5 = smov 96  }
  0xf4   : > { %989 = vadd.xlane.f32.xlu0 %v988_v33  ;;  %1231 = vmatpush.bf16.msra.mxu0 %v2877_v22  ;;  %s3337_s19 = smov 80   ;;  %s3338_s24 = smov 112  }
  0xf5   : > { %s3339_s21 = smov 64   ;;  %s3341_s2 = smov 48  }
  0xf6   : > { %v978_v34 = vld [vmem:[#allocation2 + $0x28] sm:$0xff]  ;;  %s3342_s12 = smov 16   ;;  %p2850_p1 = scmp.ne.s32.totalorder %s3323_s30, 1 }
  0xf7   : > { %v1003_v37 = vsel %vm987_vm2, %v978_v34, 0.0  ;;  %v980_v0 = vld [vmem:[#allocation2 + $0x38] sm:$0xff]  ;;  %s4331_s20 = sld [smem:[#allocation34_spill]] (!%p2850_p1) }
  0xf8   : > { %v2995_v43 = vpop.eup %2994  ;;  %v1009_v5 = vsel %vm987_vm2, %v980_v0, 0.0  ;;  %1232 = vmatpush.bf16.msra.mxu0 %v2876_v26 }
  0xf9   : > { %v1013_v44 = vmul.f32 32.0, %v2995_v43  ;;  %vm1017_vm3 = vweird.f32 %v2995_v43 }
  0xfb   : > { %1004 = vadd.xlane.f32.xlu2 %v1003_v37  ;;  %998 = vadd.xlane.f32.xlu1 %v997_v38  ;;  %v1014_v45 = vsub.f32 1.0, %v1013_v44 }
  0xfc   : > { %992 = vadd.xlane.f32.xlu0 %v991_v39 }
  0xfd   : > { %v1015_v46 = vmul.f32 %v2995_v43, %v1014_v45 }
  0xff   : > { %v1016_v47 = vadd.f32 %v2995_v43, %v1015_v46 }
 0x101   : > { %v3646_v48 = vsel %vm1017_vm3, %v2995_v43, %v1016_v47 }
 0x103   : > { %1007 = vadd.xlane.f32.xlu2 %v1006_v41 }
 0x166   : > { %v1002_v49 = vpop.xlane.xlu2 %1001  ;;  %v996_v50 = vpop.xlane.xlu1 %995 }
 0x167   : > { %v990_v51 = vpop.xlane.xlu0 %989  ;;  %v1023_v60 = vmul.f32 %v3646_v48, %v1002_v49  ;;  %v1021_v61 = vmul.f32 %v3646_v48, %v996_v50 }
 0x168   : > { %v1019_v52 = vmul.f32 %v3646_v48, %v990_v51 }
 0x169   : > { %v3664_v3 = vsub.f32 %v977_v28, %v1023_v60  ;;  %v3666_v4 = vsub.f32 %v975_v29, %v1021_v61 }
 0x16a   : > { %v3649_v53 = vsub.f32 %v973_v30, %v1019_v52 }
 0x16b   : > { %v1039_v12 = vmul.f32 %v3664_v3, %v3664_v3  ;;  %v1037_v13 = vmul.f32 %v3666_v4, %v3666_v4 }
 0x16c   : > { %v1035_v54 = vmul.f32 %v3649_v53, %v3649_v53 }
 0x16d   : > { %v1055_v17 = vsel %vm987_vm2, %v1039_v12, 0.0  ;;  %v1049_v18 = vsel %vm987_vm2, %v1037_v13, 0.0 }
 0x16e   : > { %v1005_v55 = vpop.xlane.xlu2 %1004  ;;  %v999_v56 = vpop.xlane.xlu1 %998  ;;  %v1043_v57 = vsel %vm987_vm2, %v1035_v54, 0.0 }
 0x16f   : > { %v1022_v58 = vmul.f32 %v3646_v48, %v999_v56  ;;  %1044 = vadd.xlane.f32.xlu0 %v1043_v57  ;;  %v993_v59 = vpop.xlane.xlu0 %992  ;;  %v1024_v11 = vmul.f32 %v3646_v48, %v1005_v55 }
 0x170   : > { %v1020_v62 = vmul.f32 %v3646_v48, %v993_v59 }
 0x171   : > { %v3658_v63 = vsub.f32 %v976_v35, %v1022_v58  ;;  %v3683_v16 = vsub.f32 %v978_v34, %v1024_v11 }
 0x172   : > { %v3660_v1 = vsub.f32 %v974_v36, %v1020_v62 }
 0x173   : > { %v1038_v2 = vmul.f32 %v3658_v63, %v3658_v63  ;;  %v1040_v20 = vmul.f32 %v3683_v16, %v3683_v16 }
 0x174   : > { %v1036_v6 = vmul.f32 %v3660_v1, %v3660_v1 }
 0x175   : > { %v1052_v7 = vsel %vm987_vm2, %v1038_v2, 0.0  ;;  %v1058_v21 = vsel %vm987_vm2, %v1040_v20, 0.0 }
 0x176   : > { %v1008_v8 = vpop.xlane.xlu2 %1007  ;;  %1053 = vadd.xlane.f32.xlu2 %v1052_v7  ;;  %v1046_v9 = vsel %vm987_vm2, %v1036_v6, 0.0 }
 0x177   : > { %v1025_v10 = vmul.f32 %v3646_v48, %v1008_v8  ;;  %1010 = vadd.xlane.f32.xlu0 %v1009_v5  ;;  %1047 = vadd.xlane.f32.xlu1 %v1046_v9  ;;  %v3719_v8 = vld [vmem:[%s4325_s10] ss:$0 sm:$0xff] }
 0x179   : > { %v3679_v14 = vsub.f32 %v979_v40, %v1025_v10 }
 0x17b   : > { %v1041_v15 = vmul.f32 %v3679_v14, %v3679_v14 }
 0x17d   : > { %v1061_v19 = vsel %vm987_vm2, %v1041_v15, 0.0 }
 0x17e   : > { %1062 = vadd.xlane.f32.xlu2 %v1061_v19 }
 0x17f   : > { %1056 = vadd.xlane.f32.xlu0 %v1055_v17  ;;  %1050 = vadd.xlane.f32.xlu1 %v1049_v18 }
 0x187   : > { %1059 = vadd.xlane.f32.xlu1 %v1058_v21 }
 0x1e2   : > { %v1045_v23 = vpop.xlane.xlu0 %1044 }
 0x1e3   : > { %v1067_v24 = vmul.f32 %v1045_v23, %v3646_v48 }
 0x1e5   : > { %v1075_v25 = vadd.f32 1e-05, %v1067_v24 }
 0x1e7   : > { %2996 = vrsqrt.f32 %v1075_v25  ;;  %vm1089_vm5 = vweird.f32 %v1075_v25 }
 0x1e9   : > { %v1054_v27 = vpop.xlane.xlu2 %1053 }
 0x1ea   : > { %v1070_v28 = vmul.f32 %v1054_v27, %v3646_v48  ;;  %v1048_v29 = vpop.xlane.xlu1 %1047  ;;  %v1011_v30 = vpop.xlane.xlu0 %1010 }
 0x1eb   : > { %v1068_v31 = vmul.f32 %v1048_v29, %v3646_v48  ;;  %v1026_v32 = vmul.f32 %v3646_v48, %v1011_v30 }
 0x1ec   : > { %v3697_v33 = vadd.f32 1e-05, %v1070_v28 }
 0x1ed   : > { %v2997_v34 = vpop.eup %2996  ;;  %v1076_v35 = vadd.f32 1e-05, %v1068_v31  ;;  %v3699_v36 = vsub.f32 %v980_v0, %v1026_v32 }
 0x1ee   : > { %v1084_v37 = vmul.f32 %v2997_v34, %v1075_v25  ;;  %2998 = vrsqrt.f32 %v3697_v33  ;;  %vm1090_vm4 = vweird.f32 %v2997_v34  ;;  %vm1119_vm12 = vweird.f32 %v3697_v33 }
 0x1ef   : > { %3000 = vrsqrt.f32 %v1076_v35  ;;  %v1042_v38 = vmul.f32 %v3699_v36, %v3699_v36  ;;  %vm1091_vm6 = vmor %vm1089_vm5, %vm1090_vm4  ;;  %vm1099_vm7 = vweird.f32 %v1076_v35 }
 0x1f0   : > { %v1085_v39 = vmul.f32 %v2997_v34, %v1084_v37 }
 0x1f1   : > { %v1064_v40 = vsel %vm987_vm2, %v1042_v38, 0.0 }
 0x1f2   : > { %v1086_v41 = vmul.f32 0.5, %v1085_v39  ;;  %v1051_v42 = vpop.xlane.xlu1 %1050  ;;  %1065 = vadd.xlane.f32.xlu0 %v1064_v40  ;;  %v1057_v44 = vpop.xlane.xlu0 %1056 }
 0x1f3   : > { %v1069_v43 = vmul.f32 %v1051_v42, %v3646_v48  ;;  %v1071_v51 = vmul.f32 %v1057_v44, %v3646_v48 }
 0x1f4   : > { %v3706_v45 = vpop.eup %2998  ;;  %v1087_v46 = vsub.f32 1.5, %v1086_v41 }
 0x1f5   : > { %v3001_v47 = vpop.eup %3000  ;;  %v1077_v49 = vadd.f32 1e-05, %v1069_v43  ;;  %v1114_v54 = vmul.f32 %v3706_v45, %v3697_v33  ;;  %v1079_v57 = vadd.f32 1e-05, %v1071_v51  ;;  %vm1120_vm13 = vweird.f32 %v3706_v45 }
 0x1f6   : > { %v1094_v50 = vmul.f32 %v3001_v47, %v1076_v35  ;;  %v1088_v52 = vmul.f32 %v2997_v34, %v1087_v46  ;;  %vm1100_vm8 = vweird.f32 %v3001_v47  ;;  %vm1121_vm15 = vmor %vm1119_vm12, %vm1120_vm13  ;;  %vm1276_vm13 = vcmask 130048  }
 0x1f7   : > { %3002 = vrsqrt.f32 %v1077_v49  ;;  %v1115_v60 = vmul.f32 %v3706_v45, %v1114_v54  ;;  %vm1101_vm9 = vmor %vm1099_vm7, %vm1100_vm8  ;;  %vm1109_vm10 = vweird.f32 %v1077_v49  ;;  %vm1129_vm3 = vweird.f32 %v1079_v57 }
 0x1f8   : > { %v1095_v55 = vmul.f32 %v3001_v47, %v1094_v50  ;;  %v1092_v59 = vsel %vm1091_vm6, %v2997_v34, %v1088_v52  ;;  %3004 = vrsqrt.f32 %v1079_v57 }
 0x1f9   : > { %v1163_v5 = vmul.f32 %v1092_v59, %v3649_v53  ;;  %v1116_v9 = vmul.f32 0.5, %v1115_v60  ;;  %v3728_v53 = vld [vmem:[%s4326_s9] ss:$0 sm:$0xff] }
 0x1fa   : > { %v1096_v56 = vmul.f32 0.5, %v1095_v55  ;;  %v1060_v58 = vpop.xlane.xlu1 %1059  ;;  %v1063_v55 = vpop.xlane.xlu2 %1062 }
 0x1fb   : > { %v1072_v61 = vmul.f32 %v1060_v58, %v3646_v48  ;;  %v1174_v15 = vmul.f32 %v3719_v8, %v1163_v5  ;;  %v1117_v17 = vsub.f32 1.5, %v1116_v9 }
 0x1fc   : > { %v1097_v62 = vsub.f32 1.5, %v1096_v56  ;;  %v1073_v56 = vmul.f32 %v1063_v55, %v3646_v48 }
 0x1fd   : > { %v3003_v0 = vpop.eup %3002  ;;  %v1080_v2 = vadd.f32 1e-05, %v1072_v61  ;;  %v1185_v23 = vadd.f32 %v3728_v53, %v1174_v15  ;;  %v1118_v24 = vmul.f32 %v3706_v45, %v1117_v17 }
 0x1fe   : > { %v1098_v6 = vmul.f32 %v3001_v47, %v1097_v62  ;;  %v1104_v7 = vmul.f32 %v3003_v0, %v1077_v49  ;;  %vm1110_vm11 = vweird.f32 %v3003_v0  ;;  %v3005_v19 = vpop.eup %3004 }
 0x1ff   : > { %3006 = vrsqrt.f32 %v1080_v2  ;;  %vm1111_vm14 = vmor %vm1109_vm10, %vm1110_vm11  ;;  %v1124_v25 = vmul.f32 %v3005_v19, %v1079_v57  ;;  %v1122_v30 = vsel %vm1121_vm15, %v3706_v45, %v1118_v24  ;;  %vm1139_vm0 = vweird.f32 %v1080_v2 }
 0x200   : > { %v1102_v10 = vsel %vm1101_vm9, %v3001_v47, %v1098_v6  ;;  %v1105_v11 = vmul.f32 %v3003_v0, %v1104_v7  ;;  %v1166_v34 = vmul.f32 %v1122_v30, %v3658_v63  ;;  %vm1130_vm4 = vweird.f32 %v3005_v19 }
 0x201   : > { %v1164_v12 = vmul.f32 %v1102_v10, %v3660_v1  ;;  %v1125_v31 = vmul.f32 %v3005_v19, %v1124_v25  ;;  %vm1131_vm6 = vmor %vm1129_vm3, %vm1130_vm4  ;;  %v1081_v57 = vadd.f32 1e-05, %v1073_v56 }
 0x202   : > { %v1106_v13 = vmul.f32 0.5, %v1105_v11  ;;  %v1177_v39 = vmul.f32 %v3719_v8, %v1166_v34 }
 0x203   : > { %v1175_v18 = vmul.f32 %v3719_v8, %v1164_v12  ;;  %v1126_v35 = vmul.f32 0.5, %v1125_v31  ;;  %3008 = vrsqrt.f32 %v1081_v57  ;;  %vm1149_vm7 = vweird.f32 %v1081_v57 }
 0x204   : > { %v1107_v20 = vsub.f32 1.5, %v1106_v13 }
 0x205   : > { %v1186_v1 = vadd.f32 %v3728_v53, %v1175_v18  ;;  %v3007_v21 = vpop.eup %3006  ;;  %v1127_v40 = vsub.f32 1.5, %v1126_v35 }
 0x206   : > { %v1108_v22 = vmul.f32 %v3003_v0, %v1107_v20  ;;  %v1134_v26 = vmul.f32 %v3007_v21, %v1080_v2  ;;  %vm1140_vm1 = vweird.f32 %v3007_v21 }
 0x207   : > { %v1193_v27 = vpack.c.bf16 %v1186_v1, %v1185_v23  ;;  %vm1141_vm5 = vmor %vm1139_vm0, %vm1140_vm1  ;;  %v1128_v43 = vmul.f32 %v3005_v19, %v1127_v40 }
 0x208   : > { %v1112_v28 = vsel %vm1111_vm14, %v3003_v0, %v1108_v22  ;;  %v1135_v29 = vmul.f32 %v3007_v21, %v1134_v26 }
 0x209   : > { %2786 = vmatmul.msk.bf16.vlgmr.msra.gmra.mxu0 %vm987_vm2, %v1193_v27  ;;  %v1165_v32 = vmul.f32 %v1112_v28, %v3666_v4  ;;  %v1188_v4 = vadd.f32 %v3728_v53, %v1177_v39  ;;  %v1132_v45 = vsel %vm1131_vm6, %v3005_v19, %v1128_v43  ;;  %v3009_v58 = vpop.eup %3008 }
 0x20a   : > { %v1136_v33 = vmul.f32 0.5, %v1135_v29  ;;  %v1167_v47 = vmul.f32 %v1132_v45, %v3664_v3  ;;  %vm1150_vm8 = vweird.f32 %v3009_v58 }
 0x20b   : > { %v1176_v37 = vmul.f32 %v3719_v8, %v1165_v32  ;;  %vm1151_vm9 = vmor %vm1149_vm7, %vm1150_vm8 }
 0x20c   : > { %v1137_v38 = vsub.f32 1.5, %v1136_v33  ;;  %v1178_v50 = vmul.f32 %v3719_v8, %v1167_v47 }
 0x20d   : > { %v1187_v41 = vadd.f32 %v3728_v53, %v1176_v37 }
 0x20e   : > { %v1138_v42 = vmul.f32 %v3007_v21, %v1137_v38  ;;  %v1189_v52 = vadd.f32 %v3728_v53, %v1178_v50 }
 0x20f   : > { %v1194_v63 = vpack.c.bf16 %v1188_v4, %v1187_v41 }
 0x210   : > { %v1142_v44 = vsel %vm1141_vm5, %v3007_v21, %v1138_v42 }
 0x211   : > { %v1168_v46 = vmul.f32 %v1142_v44, %v3683_v16  ;;  %v1144_v16 = vmul.f32 %v3009_v58, %v1081_v57 }
 0x213   : > { %v1179_v49 = vmul.f32 %v3719_v8, %v1168_v46  ;;  %v1145_v59 = vmul.f32 %v3009_v58, %v1144_v16 }
 0x215   : > { %v1190_v51 = vadd.f32 %v3728_v53, %v1179_v49  ;;  %v1146_v62 = vmul.f32 0.5, %v1145_v59 }
 0x217   : > { %v1195_v54 = vpack.c.bf16 %v1190_v51, %v1189_v52  ;;  %v1147_v0 = vsub.f32 1.5, %v1146_v62  ;;  %v981_v62 = vlaneseq }
 0x219   : > { %2787 = vmatmul.msk.bf16.gmra.mxu0 %vm987_vm2, %v1194_v63  ;;  %v1148_v5 = vmul.f32 %v3009_v58, %v1147_v0  ;;  %v982_v0 = vand.u32 127, %v981_v62 }
 0x21b   : > { %v1152_v9 = vsel %vm1151_vm9, %v3009_v58, %v1148_v5  ;;  %vm983_vm14 = vcmp.lt.s32.totalorder %v982_v0, 17 }
 0x21c   : > { %v1169_v12 = vmul.f32 %v1152_v9, %v3679_v14 }
 0x21e   : > { %v1180_v18 = vmul.f32 %v3719_v8, %v1169_v12 }
 0x220   : > { %v1191_v20 = vadd.f32 %v3728_v53, %v1180_v18 }
 0x229   : > { %2788 = vmatmul.msk.bf16.gmra.mxu0 %vm987_vm2, %v1195_v54 }
 0x265   : > { %v1066_v3 = vpop.xlane.xlu0 %1065 }
 0x266   : > { %v1074_v60 = vmul.f32 %v1066_v3, %v3646_v48 }
 0x268   : > { %v1082_v61 = vadd.f32 1e-05, %v1074_v60 }
 0x26a   : > { %3010 = vrsqrt.f32 %v1082_v61  ;;  %vm1159_vm11 = vweird.f32 %v1082_v61 }
 0x270   : > { %v3011_v2 = vpop.eup %3010 }
 0x271   : > { %v1154_v6 = vmul.f32 %v3011_v2, %v1082_v61  ;;  %vm1160_vm10 = vweird.f32 %v3011_v2 }
 0x272   : > { %vm1161_vm12 = vmor %vm1159_vm11, %vm1160_vm10 }
 0x273   : > { %v1155_v7 = vmul.f32 %v3011_v2, %v1154_v6  ;;  %v3340_v6 = vmov -1e+30  }
 0x275   : > { %v1156_v10 = vmul.f32 0.5, %v1155_v7  ;;  %v3807_v7 = vsel %vm983_vm14, 0.0, %v3340_v6 }
 0x277   : > { %v1157_v11 = vsub.f32 1.5, %v1156_v10 }
 0x279   : > { %v1158_v13 = vmul.f32 %v3011_v2, %v1157_v11 }
 0x27b   : > { %v1162_v15 = vsel %vm1161_vm12, %v3011_v2, %v1158_v13 }
 0x27c   : > { %v1170_v17 = vmul.f32 %v1162_v15, %v3699_v36 }
 0x27e   : > { %v1181_v19 = vmul.f32 %v3719_v8, %v1170_v17 }
 0x280   : > { %v1192_v1 = vadd.f32 %v3728_v53, %v1181_v19 }
 0x282   : > { %v1196_v21 = vpack.c.bf16 %v1192_v1, %v1191_v20 }
 0x284   : > { %2789 = vmatmul.msk.bf16.gmra.mxu0 %vm987_vm2, %v1196_v21 }
 0x286   : > { %v1234_v22 = vpop.f32.mrf.mxu0 }
 0x287   : > { %v1254_v23 = vpack.c.bf16 %v1234_v22, %v1234_v22 }
 0x289   : > { %v1266_v25 = vunpack.c.l.b16 %v1254_v23 }
 0x28e   : > { %v1236_v14 = vpop.f32.mrf.mxu0 }
 0x28f   : > { %v1255_v24 = vpack.c.bf16 %v1236_v14, %v1236_v14 }
 0x291   : > { %v1267_v26 = vunpack.c.l.b16 %v1255_v24 }
 0x293   : > { %v3761_v27 = vpack.c.b16 %v1267_v26, %v1266_v25 }
 0x295   : > { %1272 = vrot.lane.b32.xlu2 %v3761_v27, %s3336_s5 }
 0x296   : > { %v1239_v36 = vpop.f32.mrf.mxu0 }
 0x297   : > { %v1256_v8 = vpack.c.bf16 %v1239_v36, %v1239_v36 }
 0x299   : > { %v1268_v53 = vunpack.c.l.b16 %v1256_v8 }
 0x29e   : > { %v1241_v28 = vpop.f32.mrf.mxu0 }
 0x29f   : > { %v1257_v29 = vpack.c.bf16 %v1241_v28, %v1241_v28 }
 0x2a1   : > { %v1269_v30 = vunpack.c.l.b16 %v1257_v29 }
 0x2a3   : > { %v3765_v31 = vpack.c.b16 %v1269_v30, %v1268_v53 }
 0x2a5   : > { %1274 = vrot.lane.b32.xlu1 %v3765_v31, %s3336_s5 }
 0x2a6   : > { %v1244_v32 = vpop.f32.mrf.mxu0 }
 0x2a7   : > { %v1258_v33 = vpack.c.bf16 %v1244_v32, %v1244_v32 }
 0x2a9   : > { %v1312_v37 = vunpack.c.l.b16 %v1258_v33 }
 0x2ad   : > { %1561 = vrot.lane.b32.xlu1 %v3765_v31, %s3337_s19 }
 0x2ae   : > { %v1246_v34 = vpop.f32.mrf.mxu0 }
 0x2af   : > { %v1259_v35 = vpack.c.bf16 %v1246_v34, %v1246_v34 }
 0x2b1   : > { %v1313_v38 = vunpack.c.l.b16 %v1259_v35 }
 0x2b3   : > { %v3770_v39 = vpack.c.b16 %v1313_v38, %v1312_v37 }
 0x2b5   : > { %1318 = vrot.lane.b32.xlu2 %v3770_v39, %s3336_s5 }
 0x2bd   : > { %1555 = vrot.lane.b32.xlu2 %v3761_v27, %s3338_s24 }
 0x2c5   : > { %1598 = vrot.lane.b32.xlu2 %v3770_v39, %s3337_s19 }
 0x2ef   : > { %v1273_v47 = vpop.permute.xlu2 %1272 }
 0x2f0   : > { %v1284_v50 = vsel %vm1276_vm13, %v1273_v47, 0 }
 0x301   : > { %v1249_v40 = vpop.f32.mrf.mxu0 }
 0x302   : > { %v1260_v41 = vpack.c.bf16 %v1249_v40, %v1249_v40 }
 0x304   : > { %v1314_v43 = vunpack.c.l.b16 %v1260_v41 }
 0x309   : > { %v1251_v42 = vpop.f32.mrf.mxu0 }
 0x30a   : > { %v1261_v4 = vpack.c.bf16 %v1251_v42, %v1251_v42 }
 0x30c   : > { %v1315_v63 = vunpack.c.l.b16 %v1261_v4 }
 0x30e   : > { %v3776_v44 = vpack.c.b16 %v1315_v63, %v1314_v43 }
 0x30f   : > { %v1319_v52 = vpop.permute.xlu2 %1318 }
 0x310   : > { %1600 = vrot.lane.b32.xlu1 %v3776_v44, %s3337_s19  ;;  %1320 = vrot.lane.b32.xlu0 %v3776_v44, %s3336_s5  ;;  %v1329_v16 = vsel %vm1276_vm13, %v1319_v52, 0  ;;  %s4332_s5 = sld [smem:[#allocation32_spill]] (!%p2850_p1) }
 0x317   : > { %v1275_v45 = vpop.permute.xlu1 %1274  ;;  %v1556_v56 = vpop.permute.xlu2 %1555 }
 0x318   : > { %1594 = vrot.lane.b32.xlu1 %v3770_v39, %s3338_s24  ;;  %1559 = vrot.lane.b32.xlu0 %v3761_v27, %s3337_s19  ;;  %v1287_v46 = vsel %vm1276_vm13, %v1275_v45, 0 }
 0x319   : > { %1295 = vmatpush.bf16.xpose.msra.mxu1 %v1287_v46 }
 0x31f   : > { %v1562_v49 = vpop.permute.xlu1 %1561  ;;  %v1599_v60 = vpop.permute.xlu2 %1598 }
 0x320   : > { %1557 = vrot.lane.b32.xlu0 %v3765_v31, %s3338_s24  ;;  %v1573_v51 = vsel %vm1276_vm13, %v1562_v49, 0  ;;  %v1609_v61 = vsel %vm1276_vm13, %v1599_v60, 0 }
 0x321   : > { %1296 = vmatpush.bf16.xpose.msra.mxu1 %v1284_v50 }
 0x328   : > { %1596 = vrot.lane.b32.xlu0 %v3776_v44, %s3338_s24  ;;  %2790 = vmatmul.msk.bf16.vlgmr.msra.gmra.mxu1 %vm1276_vm13, %v3761_v27 }
 0x329   : > { %1581 = vmatpush.bf16.xpose.msrb.mxu1 %v1573_v51 }
 0x330   : > { %1475 = vrot.lane.b32.xlu0 %v3761_v27, %s3339_s21 }
 0x338   : > { %1516 = vrot.lane.b32.xlu0 %v3770_v39, %s3339_s21  ;;  %2791 = vmatmul.msk.bf16.gmra.mxu1 %vm1276_vm13, %v3765_v31 }
 0x382   : > { %v1321_v54 = vpop.permute.xlu0 %1320  ;;  %v1601_v57 = vpop.permute.xlu1 %1600 }
 0x383   : > { %v1332_v55 = vsel %vm1276_vm13, %v1321_v54, 0  ;;  %v1612_v3 = vsel %vm1276_vm13, %v1601_v57, 0 }
 0x384   : > { %1340 = vmatpush.bf16.xpose.msra.mxu2 %v1332_v55 }
 0x38a   : > { %v1560_v58 = vpop.permute.xlu0 %1559  ;;  %v1595_v17 = vpop.permute.xlu1 %1594 }
 0x38b   : > { %v1570_v59 = vsel %vm1276_vm13, %v1560_v58, 0 }
 0x38c   : > { %1341 = vmatpush.bf16.xpose.msra.mxu2 %v1329_v16  ;;  %1582 = vmatpush.bf16.xpose.msrb.mxu1 %v1570_v59 }
 0x392   : > { %v1558_v2 = vpop.permute.xlu0 %1557 }
 0x393   : > { %2792 = vmatmul.msk.bf16.vlgmr.msra.gmra.mxu2 %vm1276_vm13, %v3770_v39  ;;  %2798 = vmatmul.msk.bf16.vlgmr.msrb.gmra.mxu1 %vm1276_vm13, %v1556_v56 }
 0x394   : > { %1620 = vmatpush.bf16.xpose.msrb.mxu2 %v1612_v3 }
 0x39a   : > { %v1597_v22 = vpop.permute.xlu0 %1596 }
 0x39c   : > { %1621 = vmatpush.bf16.xpose.msrb.mxu2 %v1609_v61 }
 0x3a2   : > { %v1476_v54 = vpop.permute.xlu0 %1475 }
 0x3a3   : > { %2793 = vmatmul.msk.bf16.gmra.mxu2 %vm1276_vm13, %v3776_v44  ;;  %2799 = vmatmul.msk.bf16.gmra.mxu1 %vm1276_vm13, %v1558_v2 }
 0x3a5   : > { %v1298_v5 = vpop.f32.mrf.mxu1 }
 0x3a6   : > { %v1353_v9 = vmul.f32 0.25, %v1298_v5 }
 0x3a8   : > { %v3810_v10 = vadd.f32 %v1353_v9, %v3807_v7 }
 0x3aa   : > { %v1369_v11 = vsel %vm987_vm2, %v3810_v10, -inf  ;;  %v1517_v60 = vpop.permute.xlu0 %1516 }
 0x3ab   : > { %1370 = vmax.xlane.f32.xlu2 %v1369_v11 }
 0x3ad   : > { %v1300_v12 = vpop.f32.mrf.mxu1 }
 0x3ae   : > { %v1354_v13 = vmul.f32 0.25, %v1300_v12 }
 0x3b0   : > { %v3815_v15 = vadd.f32 %v1354_v13, %v3807_v7 }
 0x3b2   : > { %v1372_v18 = vsel %vm987_vm2, %v3815_v15, -inf }
 0x3b3   : > { %2800 = vmatmul.msk.bf16.vlgmr.msrb.gmra.mxu2 %vm1276_vm13, %v1595_v17  ;;  %1373 = vmax.xlane.f32.xlu1 %v1372_v18 }
 0x3b5   : > { %v1303_v19 = vpop.f32.mrf.mxu1 }
 0x3b6   : > { %v1355_v20 = vmul.f32 0.25, %v1303_v19 }
 0x3b8   : > { %v3821_v1 = vadd.f32 %v1355_v20, %v3807_v7 }
 0x3ba   : > { %v1375_v21 = vsel %vm987_vm2, %v3821_v1, -inf }
 0x3bb   : > { %1376 = vmax.xlane.f32.xlu0 %v1375_v21 }
 0x3bd   : > { %v1305_v23 = vpop.f32.mrf.mxu1 }
 0x3be   : > { %v1356_v14 = vmul.f32 0.25, %v1305_v23 }
 0x3c0   : > { %v3831_v24 = vadd.f32 %v1356_v14, %v3807_v7 }
 0x3c2   : > { %v1378_v25 = vsel %vm987_vm2, %v3831_v24, -inf }
 0x3c3   : > { %2801 = vmatmul.msk.bf16.gmra.mxu2 %vm1276_vm13, %v1597_v22  ;;  %1518 = vrot.lane.b32.xlu2 %v3776_v44, %s3339_s21 }
 0x3cc   : > { %1477 = vrot.lane.b32.xlu1 %v3765_v31, %s3339_s21  ;;  %s4333_s21 = sld [smem:[#allocation33_spill]] (!%p2850_p1) }
 0x3ec   : > { %1379 = vmax.xlane.f32.xlu2 %v1378_v25 }
 0x410   : > { %v1584_v26 = vpop.f32.mrf.mxu1 }
 0x411   : > { %v1633_v36 = vmul.f32 0.25, %v1584_v26 }
 0x413   : > { %v3836_v8 = vadd.f32 %v1633_v36, %v3807_v7 }
 0x415   : > { %v1649_v28 = vsel %vm987_vm2, %v3836_v8, -inf }
 0x416   : > { %v1343_v29 = vpop.f32.mrf.mxu2  ;;  %1650 = vmax.xlane.f32.xlu0 %v1649_v28 }
 0x417   : > { %v1357_v53 = vmul.f32 0.25, %v1343_v29 }
 0x418   : > { %v1586_v30 = vpop.f32.mrf.mxu1 }
 0x419   : > { %v1634_v32 = vmul.f32 0.25, %v1586_v30  ;;  %v3841_v33 = vadd.f32 %v1357_v53, %v3807_v7 }
 0x41b   : > { %v1381_v34 = vsel %vm987_vm2, %v3841_v33, -inf  ;;  %v3846_v35 = vadd.f32 %v1634_v32, %v3807_v7 }
 0x41c   : > { %1382 = vmax.xlane.f32.xlu1 %v1381_v34 }
 0x41d   : > { %v1652_v37 = vsel %vm987_vm2, %v3846_v35, -inf }
 0x41e   : > { %v1345_v38 = vpop.f32.mrf.mxu2  ;;  %1653 = vmax.xlane.f32.xlu2 %v1652_v37  ;;  %v1371_v2 = vpop.xlane.xlu2 %1370 }
 0x41f   : > { %v1358_v40 = vmul.f32 0.25, %v1345_v38  ;;  %v1393_v26 = vsub.f32 %v3810_v10, %v1371_v2 }
 0x420   : > { %v1589_v41 = vpop.f32.mrf.mxu1 }
 0x421   : > { %v1635_v42 = vmul.f32 0.25, %v1589_v41  ;;  %v3851_v4 = vadd.f32 %v1358_v40, %v3807_v7  ;;  %v1401_v28 = vmul.f32 1.442695, %v1393_v26 }
 0x423   : > { %v1384_v43 = vsel %vm987_vm2, %v3851_v4, -inf  ;;  %v3856_v63 = vadd.f32 %v1635_v42, %v3807_v7 }
 0x424   : > { %1385 = vmax.xlane.f32.xlu0 %v1384_v43 }
 0x425   : > { %v1655_v45 = vsel %vm987_vm2, %v3856_v63, -inf }
 0x426   : > { %v1348_v46 = vpop.f32.mrf.mxu2  ;;  %1656 = vmax.xlane.f32.xlu1 %v1655_v45  ;;  %v1374_v61 = vpop.xlane.xlu1 %1373 }
 0x427   : > { %v1359_v47 = vmul.f32 0.25, %v1348_v46  ;;  %v1394_v5 = vsub.f32 %v3815_v15, %v1374_v61  ;;  %v1519_v15 = vpop.permute.xlu2 %1518 }
 0x428   : > { %v1591_v49 = vpop.f32.mrf.mxu1 }
 0x429   : > { %v3861_v50 = vadd.f32 %v1359_v47, %v3807_v7  ;;  %v1636_v51 = vmul.f32 0.25, %v1591_v49  ;;  %v1403_v9 = vmul.f32 1.442695, %v1394_v5 }
 0x42b   : > { %v1387_v52 = vsel %vm987_vm2, %v3861_v50, -inf  ;;  %v3866_v57 = vadd.f32 %v1636_v51, %v3807_v7  ;;  %3012 = vpow2.f32 %v1403_v9 }
 0x42c   : > { %1388 = vmax.xlane.f32.xlu2 %v1387_v52 }
 0x42d   : > { %v1658_v59 = vsel %vm987_vm2, %v3866_v57, -inf }
 0x42e   : > { %v1350_v55 = vpop.f32.mrf.mxu2  ;;  %v1377_v12 = vpop.xlane.xlu0 %1376 }
 0x42f   : > { %v1360_v56 = vmul.f32 0.25, %v1350_v55  ;;  %v1395_v19 = vsub.f32 %v3821_v1, %v1377_v12 }
 0x431   : > { %v3869_v58 = vadd.f32 %v1360_v56, %v3807_v7  ;;  %v1405_v21 = vmul.f32 1.442695, %v1395_v19  ;;  %v3887_v14 = vpop.eup %3012 }
 0x432   : > { %v1420_v1 = vsel %vm987_vm2, %v3887_v14, 0.0 }
 0x433   : > { %v1390_v16 = vsel %vm987_vm2, %v3869_v58, -inf  ;;  %3014 = vpow2.f32 %v1405_v21 }
 0x434   : > { %1391 = vmax.xlane.f32.xlu1 %v1390_v16  ;;  %1659 = vmax.xlane.f32.xlu2 %v1658_v59  ;;  %3016 = vpow2.f32 %v1401_v28 }
 0x436   : > { %v1623_v3 = vpop.f32.mrf.mxu2 }
 0x437   : > { %v1637_v62 = vmul.f32 0.25, %v1623_v3 }
 0x439   : > { %v3876_v0 = vadd.f32 %v1637_v62, %v3807_v7  ;;  %v3897_v30 = vpop.eup %3014 }
 0x43a   : > { %v1423_v34 = vsel %vm987_vm2, %v3897_v30, 0.0  ;;  %v3906_v37 = vpop.eup %3016 }
 0x43b   : > { %v1661_v6 = vsel %vm987_vm2, %v3876_v0, -inf  ;;  %v1417_v38 = vsel %vm987_vm2, %v3906_v37, 0.0 }
 0x43c   : > { %1662 = vmax.xlane.f32.xlu1 %v1661_v6 }
 0x43e   : > { %v1625_v11 = vpop.f32.mrf.mxu2  ;;  %v1478_v13 = vpop.permute.xlu1 %1477 }
 0x43f   : > { %v1638_v17 = vmul.f32 0.25, %v1625_v11  ;;  %1493 = vmatpush.bf16.msra.mxu3 %v1478_v13 }
 0x441   : > { %v3882_v18 = vadd.f32 %v1638_v17, %v3807_v7 }
 0x443   : > { %v1664_v20 = vsel %vm987_vm2, %v3882_v18, -inf  ;;  %1494 = vmatpush.bf16.msra.mxu3 %v1476_v54 }
 0x444   : > { %1665 = vmax.xlane.f32.xlu2 %v1664_v20 }
 0x446   : > { %v1628_v22 = vpop.f32.mrf.mxu2 }
 0x447   : > { %1534 = vmatpush.bf16.msrb.mxu3 %v1519_v15  ;;  %v1639_v23 = vmul.f32 0.25, %v1628_v22 }
 0x449   : > { %v3890_v25 = vadd.f32 %v1639_v23, %v3807_v7 }
 0x44b   : > { %1535 = vmatpush.bf16.msrb.mxu3 %v1517_v60  ;;  %v1667_v36 = vsel %vm987_vm2, %v3890_v25, -inf }
 0x44c   : > { %1421 = vadd.xlane.f32.xlu2 %v1420_v1  ;;  %1668 = vmax.xlane.f32.xlu1 %v1667_v36 }
 0x44e   : > { %v1630_v29 = vpop.f32.mrf.mxu2 }
 0x44f   : > { %v1640_v53 = vmul.f32 0.25, %v1630_v29 }
 0x451   : > { %v3900_v32 = vadd.f32 %v1640_v53, %v3807_v7 }
 0x453   : > { %v1670_v10 = vsel %vm987_vm2, %v3900_v32, -inf }
 0x454   : > { %1671 = vmax.xlane.f32.xlu0 %v1670_v10  ;;  %1424 = vadd.xlane.f32.xlu2 %v1423_v34 }
 0x45c   : > { %1418 = vadd.xlane.f32.xlu0 %v1417_v38 }
 0x45f   : > { %v1380_v40 = vpop.xlane.xlu2 %1379 }
 0x460   : > { %v1396_v41 = vsub.f32 %v3831_v24, %v1380_v40 }
 0x462   : > { %v1407_v7 = vmul.f32 1.442695, %v1396_v41 }
 0x464   : > { %3018 = vpow2.f32 %v1407_v7 }
 0x46a   : > { %v3911_v42 = vpop.eup %3018 }
 0x46b   : > { %v1426_v43 = vsel %vm987_vm2, %v3911_v42, 0.0 }
 0x46c   : > { %1427 = vadd.xlane.f32.xlu2 %v1426_v43 }
 0x489   : > { %v1651_v45 = vpop.xlane.xlu0 %1650 }
 0x48a   : > { %v1673_v46 = vsub.f32 %v3836_v8, %v1651_v45 }
 0x48c   : > { %v1681_v47 = vmul.f32 1.442695, %v1673_v46 }
 0x48e   : > { %3020 = vpow2.f32 %v1681_v47 }
 0x48f   : > { %v1383_v49 = vpop.xlane.xlu1 %1382 }
 0x490   : > { %v1397_v51 = vsub.f32 %v3841_v33, %v1383_v49 }
 0x491   : > { %v1654_v52 = vpop.xlane.xlu2 %1653 }
 0x492   : > { %v1409_v54 = vmul.f32 1.442695, %v1397_v51  ;;  %v1674_v24 = vsub.f32 %v3846_v35, %v1654_v52 }
 0x494   : > { %v3918_v55 = vpop.eup %3020  ;;  %3022 = vpow2.f32 %v1409_v54  ;;  %v1683_v56 = vmul.f32 1.442695, %v1674_v24 }
 0x495   : > { %v1697_v16 = vsel %vm987_vm2, %v3918_v55, 0.0 }
 0x496   : > { %3024 = vpow2.f32 %v1683_v56  ;;  %1698 = vadd.xlane.f32.xlu1 %v1697_v16 }
 0x497   : > { %v1386_v59 = vpop.xlane.xlu0 %1385 }
 0x498   : > { %v1398_v8 = vsub.f32 %v3851_v4, %v1386_v59 }
 0x499   : > { %v1657_v3 = vpop.xlane.xlu1 %1656 }
 0x49a   : > { %v3923_v60 = vpop.eup %3022  ;;  %v1411_v33 = vmul.f32 1.442695, %v1398_v8  ;;  %v1675_v61 = vsub.f32 %v3856_v63, %v1657_v3 }
 0x49b   : > { %v1429_v35 = vsel %vm987_vm2, %v3923_v60, 0.0 }
 0x49c   : > { %v3928_v62 = vpop.eup %3024  ;;  %3026 = vpow2.f32 %v1411_v33  ;;  %v1685_v2 = vmul.f32 1.442695, %v1675_v61  ;;  %1430 = vadd.xlane.f32.xlu0 %v1429_v35 }
 0x49d   : > { %v1700_v5 = vsel %vm987_vm2, %v3928_v62, 0.0 }
 0x49e   : > { %3028 = vpow2.f32 %v1685_v2  ;;  %1701 = vadd.xlane.f32.xlu1 %v1700_v5 }
 0x49f   : > { %v1389_v4 = vpop.xlane.xlu2 %1388 }
 0x4a0   : > { %v1399_v6 = vsub.f32 %v3861_v50, %v1389_v4 }
 0x4a2   : > { %v3933_v9 = vpop.eup %3026  ;;  %v1413_v11 = vmul.f32 1.442695, %v1399_v6 }
 0x4a3   : > { %v1432_v63 = vsel %vm987_vm2, %v3933_v9, 0.0 }
 0x4a4   : > { %v3937_v12 = vpop.eup %3028  ;;  %3030 = vpow2.f32 %v1413_v11  ;;  %1433 = vadd.xlane.f32.xlu2 %v1432_v63 }
 0x4a5   : > { %v1703_v13 = vsel %vm987_vm2, %v3937_v12, 0.0 }
 0x4a6   : > { %1704 = vadd.xlane.f32.xlu0 %v1703_v13 }
 0x4a7   : > { %v1392_v17 = vpop.xlane.xlu1 %1391  ;;  %v1660_v23 = vpop.xlane.xlu2 %1659 }
 0x4a8   : > { %v1400_v19 = vsub.f32 %v3869_v58, %v1392_v17  ;;  %v1676_v53 = vsub.f32 %v3866_v57, %v1660_v23 }
 0x4aa   : > { %v3942_v20 = vpop.eup %3030  ;;  %v1415_v50 = vmul.f32 1.442695, %v1400_v19  ;;  %v1687_v34 = vmul.f32 1.442695, %v1676_v53 }
 0x4ab   : > { %v1435_v15 = vsel %vm987_vm2, %v3942_v20, 0.0 }
 0x4ac   : > { %3032 = vpow2.f32 %v1415_v50  ;;  %1436 = vadd.xlane.f32.xlu1 %v1435_v15 }
 0x4af   : > { %v1663_v29 = vpop.xlane.xlu1 %1662 }
 0x4b0   : > { %v1677_v24 = vsub.f32 %v3876_v0, %v1663_v29 }
 0x4b2   : > { %v3946_v21 = vpop.eup %3032  ;;  %v1689_v3 = vmul.f32 1.442695, %v1677_v24 }
 0x4b3   : > { %v1438_v22 = vsel %vm987_vm2, %v3946_v21, 0.0 }
 0x4b4   : > { %1439 = vadd.xlane.f32.xlu1 %v1438_v22 }
 0x4b7   : > { %v1666_v58 = vpop.xlane.xlu2 %1665 }
 0x4b8   : > { %v1678_v10 = vsub.f32 %v3882_v18, %v1666_v58 }
 0x4ba   : > { %1798 = vrot.lane.b32.xlu0 %v3776_v44, %s3341_s2 }
 0x4bc   : > { %1757 = vrot.lane.b32.xlu2 %v3765_v31, %s3341_s2  ;;  %v1691_v31 = vmul.f32 1.442695, %v1678_v10 }
 0x4bf   : > { %v1422_v26 = vpop.xlane.xlu2 %1421  ;;  %v1669_v7 = vpop.xlane.xlu1 %1668 }
 0x4c0   : > { %3034 = vrcp.f32 %v1422_v26  ;;  %v1679_v45 = vsub.f32 %v3890_v25, %v1669_v7 }
 0x4c6   : > { %v3035_v28 = vpop.eup %3034 }
 0x4c7   : > { %v1672_v1 = vpop.xlane.xlu0 %1671  ;;  %v1450_v44 = vmul.f32 %v3035_v28, %v3887_v14  ;;  %v1425_v43 = vpop.xlane.xlu2 %1424  ;;  %v1693_v14 = vmul.f32 1.442695, %v1679_v45 }
 0x4c8   : > { %v1680_v4 = vsub.f32 %v3900_v32, %v1672_v1 }
 0x4c9   : > { %v1458_v41 = vpack.c.bf16 %v1450_v44, %v1450_v44 }
 0x4ca   : > { %v1695_v11 = vmul.f32 1.442695, %v1680_v4 }
 0x4cb   : > { %v1470_v57 = vunpack.c.l.b16 %v1458_v41 }
 0x4cd   : > { %1755 = vrot.lane.b32.xlu1 %v3761_v27, %s3341_s2 }
 0x4cf   : > { %v1419_v36 = vpop.xlane.xlu0 %1418 }
 0x4d0   : > { %3036 = vrcp.f32 %v1419_v36 }
 0x4d1   : > { %3038 = vpow2.f32 %v1687_v34 }
 0x4d2   : > { %3040 = vpow2.f32 %v1691_v31 }
 0x4d3   : > { %3042 = vrcp.f32 %v1425_v43 }
 0x4d6   : > { %v3037_v38 = vpop.eup %3036 }
 0x4d7   : > { %v1449_v40 = vmul.f32 %v3037_v38, %v3906_v37  ;;  %v3961_v18 = vpop.eup %3038 }
 0x4d8   : > { %v3964_v49 = vpop.eup %3040  ;;  %v1706_v25 = vsel %vm987_vm2, %v3961_v18, 0.0 }
 0x4d9   : > { %v1457_v27 = vpack.c.bf16 %v1449_v40, %v1449_v40  ;;  %v3043_v51 = vpop.eup %3042  ;;  %v1712_v52 = vsel %vm987_vm2, %v3964_v49, 0.0 }
 0x4da   : > { %v1451_v54 = vmul.f32 %v3043_v51, %v3897_v30 }
 0x4db   : > { %v1469_v46 = vunpack.c.l.b16 %v1457_v27 }
 0x4dc   : > { %v1459_v59 = vpack.c.bf16 %v1451_v54, %v1451_v54 }
 0x4dd   : > { %v1473_v47 = vpack.c.b16 %v1470_v57, %v1469_v46 }
 0x4de   : > { %v1471_v35 = vunpack.c.l.b16 %v1459_v59 }
 0x4df   : > { %2794 = vmatmul.msk.bf16.vlgmr.msra.gmra.mxu3 %vm987_vm2, %v1473_v47  ;;  %v1428_v37 = vpop.xlane.xlu2 %1427 }
 0x4e0   : > { %3044 = vrcp.f32 %v1428_v37 }
 0x4e1   : > { %3046 = vpow2.f32 %v1693_v14 }
 0x4e2   : > { %3048 = vpow2.f32 %v1689_v3 }
 0x4e4   : > { %1713 = vadd.xlane.f32.xlu0 %v1712_v52 }
 0x4e5   : > { %1707 = vadd.xlane.f32.xlu2 %v1706_v25 }
 0x4e6   : > { %v3045_v56 = vpop.eup %3044 }
 0x4e7   : > { %v1452_v16 = vmul.f32 %v3045_v56, %v3911_v42  ;;  %v3973_v8 = vpop.eup %3046 }
 0x4e8   : > { %v1715_v61 = vsel %vm987_vm2, %v3973_v8, 0.0  ;;  %v3978_v0 = vpop.eup %3048 }
 0x4e9   : > { %v1460_v33 = vpack.c.bf16 %v1452_v16, %v1452_v16  ;;  %v1709_v30 = vsel %vm987_vm2, %v3978_v0, 0.0 }
 0x4eb   : > { %v1472_v2 = vunpack.c.l.b16 %v1460_v33 }
 0x4ed   : > { %1716 = vadd.xlane.f32.xlu2 %v1715_v61  ;;  %v1474_v5 = vpack.c.b16 %v1472_v2, %v1471_v35 }
 0x4ef   : > { %2795 = vmatmul.msk.bf16.gmra.mxu3 %vm987_vm2, %v1474_v5 }
 0x4f7   : > { %1710 = vadd.xlane.f32.xlu1 %v1709_v30 }
 0x4f8   : > { %1796 = vrot.lane.b32.xlu0 %v3770_v39, %s3341_s2 }
 0x509   : > { %v1699_v42 = vpop.xlane.xlu1 %1698 }
 0x50f   : > { %v1431_v6 = vpop.xlane.xlu0 %1430 }
 0x510   : > { %3050 = vrcp.f32 %v1431_v6 }
 0x511   : > { %3052 = vpow2.f32 %v1695_v11  ;;  %v1702_v63 = vpop.xlane.xlu1 %1701 }
 0x516   : > { %v3051_v17 = vpop.eup %3050 }
 0x517   : > { %v1434_v13 = vpop.xlane.xlu2 %1433  ;;  %v1453_v19 = vmul.f32 %v3051_v17, %v3923_v60  ;;  %v3986_v50 = vpop.eup %3052 }
 0x518   : > { %3054 = vrcp.f32 %v1434_v13  ;;  %v1718_v26 = vsel %vm987_vm2, %v3986_v50, 0.0 }
 0x519   : > { %v1461_v22 = vpack.c.bf16 %v1453_v19, %v1453_v19  ;;  %v1705_v43 = vpop.xlane.xlu0 %1704 }
 0x51b   : > { %v1510_v1 = vunpack.c.l.b16 %v1461_v22 }
 0x51e   : > { %v3055_v15 = vpop.eup %3054 }
 0x51f   : > { %v1454_v23 = vmul.f32 %v3055_v15, %v3933_v9  ;;  %v1437_v39 = vpop.xlane.xlu1 %1436  ;;  %v1758_v58 = vpop.permute.xlu2 %1757 }
 0x520   : > { %1773 = vmatpush.bf16.msra.mxu3 %v1758_v58  ;;  %3056 = vrcp.f32 %v1437_v39 }
 0x521   : > { %v1462_v32 = vpack.c.bf16 %v1454_v23, %v1454_v23 }
 0x522   : > { %1719 = vadd.xlane.f32.xlu0 %v1718_v26 }
 0x523   : > { %v1511_v36 = vunpack.c.l.b16 %v1462_v32 }
 0x525   : > { %v1514_v28 = vpack.c.b16 %v1511_v36, %v1510_v1 }
 0x526   : > { %v3057_v60 = vpop.eup %3056 }
 0x527   : > { %v1440_v29 = vpop.xlane.xlu1 %1439  ;;  %2796 = vmatmul.msk.bf16.vlgmr.msrb.gmra.mxu3 %vm987_vm2, %v1514_v28  ;;  %v1455_v53 = vmul.f32 %v3057_v60, %v3942_v20 }
 0x528   : > { %3058 = vrcp.f32 %v1440_v29 }
 0x529   : > { %v1463_v44 = vpack.c.bf16 %v1455_v53, %v1455_v53  ;;  %3060 = vrcp.f32 %v1702_v63 }
 0x52a   : > { %3062 = vrcp.f32 %v1699_v42 }
 0x52b   : > { %v1512_v38 = vunpack.c.l.b16 %v1463_v44  ;;  %3064 = vrcp.f32 %v1705_v43 }
 0x52e   : > { %v3059_v9 = vpop.eup %3058 }
 0x52f   : > { %v1456_v10 = vmul.f32 %v3059_v9, %v3946_v21  ;;  %v3061_v41 = vpop.eup %3060  ;;  %v1799_v21 = vpop.permute.xlu0 %1798 }
 0x530   : > { %v3063_v7 = vpop.eup %3062  ;;  %v1730_v27 = vmul.f32 %v3061_v41, %v3928_v62 }
 0x531   : > { %v1464_v34 = vpack.c.bf16 %v1456_v10, %v1456_v10  ;;  %v1729_v45 = vmul.f32 %v3063_v7, %v3918_v55  ;;  %v3065_v52 = vpop.eup %3064 }
 0x532   : > { %v1738_v20 = vpack.c.bf16 %v1730_v27, %v1730_v27  ;;  %v1731_v25 = vmul.f32 %v3065_v52, %v3937_v12 }
 0x533   : > { %v1513_v31 = vunpack.c.l.b16 %v1464_v34  ;;  %v1737_v46 = vpack.c.bf16 %v1729_v45, %v1729_v45 }
 0x534   : > { %v1750_v47 = vunpack.c.l.b16 %v1738_v20  ;;  %v1739_v54 = vpack.c.bf16 %v1731_v25, %v1731_v25 }
 0x535   : > { %v1515_v40 = vpack.c.b16 %v1513_v31, %v1512_v38  ;;  %v1749_v14 = vunpack.c.l.b16 %v1737_v46 }
 0x536   : > { %v1751_v59 = vunpack.c.l.b16 %v1739_v54 }
 0x537   : > { %2797 = vmatmul.msk.bf16.gmra.mxu3 %vm987_vm2, %v1515_v40  ;;  %v1753_v37 = vpack.c.b16 %v1750_v47, %v1749_v14 }
 0x53f   : > { %v1756_v57 = vpop.permute.xlu1 %1755 }
 0x540   : > { %1774 = vmatpush.bf16.msra.mxu3 %v1756_v57 }
 0x544   : > { %1814 = vmatpush.bf16.msrb.mxu3 %v1799_v21 }
 0x547   : > { %2802 = vmatmul.msk.bf16.vlgmr.msra.gmra.mxu3 %vm987_vm2, %v1753_v37 }
 0x557   : > { %v1714_v24 = vpop.xlane.xlu0 %1713 }
 0x558   : > { %v1708_v51 = vpop.xlane.xlu2 %1707 }
 0x559   : > { %3066 = vrcp.f32 %v1708_v51 }
 0x55a   : > { %3068 = vrcp.f32 %v1714_v24 }
 0x55f   : > { %v3067_v62 = vpop.eup %3066 }
 0x560   : > { %v1732_v55 = vmul.f32 %v3067_v62, %v3961_v18  ;;  %v3069_v5 = vpop.eup %3068  ;;  %v1717_v36 = vpop.xlane.xlu2 %1716 }
 0x561   : > { %v1734_v4 = vmul.f32 %v3069_v5, %v3964_v49 }
 0x562   : > { %v1496_v56 = vpop.f32.mrf.mxu3  ;;  %v1740_v16 = vpack.c.bf16 %v1732_v55, %v1732_v55 }
 0x563   : > { %v1547_v61 = vpack.c.bf16 %v1496_v56, %v1496_v56  ;;  %v1742_v63 = vpack.c.bf16 %v1734_v4, %v1734_v4 }
 0x564   : > { %v1752_v3 = vunpack.c.l.b16 %v1740_v16 }
 0x565   : > { %v4001_v42 = vunpack.c.l.b16 %v1547_v61  ;;  %v1791_v15 = vunpack.c.l.b16 %v1742_v63  ;;  %v2878_v63 = vld [vmem:[%s3538_s16] sm:$0xff] }
 0x566   : > { %v1754_v33 = vpack.c.b16 %v1752_v3, %v1751_v59 }
 0x568   : > { %2803 = vmatmul.msk.bf16.gmra.mxu3 %vm987_vm2, %v1754_v33 }
 0x56a   : > { %v1711_v35 = vpop.xlane.xlu1 %1710  ;;  %v1498_v2 = vpop.f32.mrf.mxu3 }
 0x56b   : > { %3070 = vrcp.f32 %v1711_v35  ;;  %v1548_v30 = vpack.c.bf16 %v1498_v2, %v1498_v2  ;;  %v1797_v12 = vpop.permute.xlu0 %1796 }
 0x56c   : > { %1815 = vmatpush.bf16.msrb.mxu3 %v1797_v12  ;;  %3072 = vrcp.f32 %v1717_v36 }
 0x56d   : > { %v4003_v18 = vunpack.c.l.b16 %v1548_v30 }
 0x56f   : > { %v1851_v6 = vpack.c.b16 %v4003_v18, %v4001_v42  ;;  %v2989_v18 = vld [vmem:[%s833_s22] ss:$0 sm:$0xff] }
 0x571   : > { %v3071_v11 = vpop.eup %3070 }
 0x572   : > { %v1733_v13 = vmul.f32 %v3071_v11, %v3978_v0  ;;  %v1501_v17 = vpop.f32.mrf.mxu3  ;;  %v3073_v28 = vpop.eup %3072  ;;  %v2879_v11 = vld [vmem:[%s3538_s16 + $0x8] sm:$0xff]  ;;  %s4334_s16 = sld [smem:[#allocation35_spill]] (!%p2850_p1) }
 0x573   : > { %v1549_v39 = vpack.c.bf16 %v1501_v17, %v1501_v17  ;;  %v1735_v29 = vmul.f32 %v3073_v28, %v3973_v8  ;;  %1929 = vmatpush.bf16.msra.mxu1 %v2879_v11 }
 0x574   : > { %v1741_v19 = vpack.c.bf16 %v1733_v13, %v1733_v13 }
 0x575   : > { %v4010_v26 = vunpack.c.l.b16 %v1549_v39  ;;  %v1743_v9 = vpack.c.bf16 %v1735_v29, %v1735_v29 }
 0x576   : > { %v1790_v22 = vunpack.c.l.b16 %v1741_v19 }
 0x577   : > { %v1792_v44 = vunpack.c.l.b16 %v1743_v9  ;;  %1930 = vmatpush.bf16.msra.mxu1 %v2878_v63 }
 0x578   : > { %v1794_v23 = vpack.c.b16 %v1791_v15, %v1790_v22 }
 0x57a   : > { %2804 = vmatmul.msk.bf16.vlgmr.msrb.gmra.mxu3 %vm987_vm2, %v1794_v23  ;;  %v1503_v58 = vpop.f32.mrf.mxu3 }
 0x57b   : > { %v1550_v32 = vpack.c.bf16 %v1503_v58, %v1503_v58 }
 0x57d   : > { %v4012_v49 = vunpack.c.l.b16 %v1550_v32 }
 0x57f   : > { %v1852_v1 = vpack.c.b16 %v4012_v49, %v4010_v26  ;;  %v3108_v49 = vld [vmem:[#allocation2] sm:$0xff] }
 0x595   : > { %v1720_v0 = vpop.xlane.xlu0 %1719 }
 0x596   : > { %3074 = vrcp.f32 %v1720_v0 }
 0x59c   : > { %v3075_v60 = vpop.eup %3074 }
 0x59d   : > { %v1736_v53 = vmul.f32 %v3075_v60, %v3986_v50 }
 0x59f   : > { %v1744_v10 = vpack.c.bf16 %v1736_v53, %v1736_v53 }
 0x5a1   : > { %v1793_v34 = vunpack.c.l.b16 %v1744_v10 }
 0x5a3   : > { %v1795_v38 = vpack.c.b16 %v1793_v34, %v1792_v44  ;;  %v3109_v44 = vld [vmem:[#allocation2 + $0x8] sm:$0xff] }
 0x5a5   : > { %2805 = vmatmul.msk.bf16.gmra.mxu3 %vm987_vm2, %v1795_v38 }
 0x5aa   : > { %v1537_v31 = vpop.f32.mrf.mxu3 }
 0x5ab   : > { %v1551_v40 = vpack.c.bf16 %v1537_v31, %v1537_v31 }
 0x5ad   : > { %v1847_v43 = vunpack.c.l.b16 %v1551_v40 }
 0x5b2   : > { %v1539_v41 = vpop.f32.mrf.mxu3 }
 0x5b3   : > { %v1552_v7 = vpack.c.bf16 %v1539_v41, %v1539_v41  ;;  %v3110_v41 = vld [vmem:[#allocation2 + $0x10] sm:$0xff] }
 0x5b5   : > { %v1848_v27 = vunpack.c.l.b16 %v1552_v7 }
 0x5b7   : > { %v1853_v45 = vpack.c.b16 %v1848_v27, %v1847_v43 }
 0x5ba   : > { %v1542_v20 = vpop.f32.mrf.mxu3 }
 0x5bb   : > { %v1553_v46 = vpack.c.bf16 %v1542_v20, %v1542_v20  ;;  %v3111_v20 = vld [vmem:[#allocation2 + $0x18] sm:$0xff] }
 0x5bd   : > { %v1849_v21 = vunpack.c.l.b16 %v1553_v46 }
 0x5c2   : > { %v1544_v8 = vpop.f32.mrf.mxu3 }
 0x5c3   : > { %v1554_v57 = vpack.c.bf16 %v1544_v8, %v1544_v8 }
 0x5c5   : > { %v1850_v50 = vunpack.c.l.b16 %v1554_v57 }
 0x5c7   : > { %v1854_v47 = vpack.c.b16 %v1850_v50, %v1849_v21  ;;  %v3112_v50 = vld [vmem:[#allocation2 + $0x20] sm:$0xff] }
 0x5ca   : > { %v1776_v14 = vpop.f32.mrf.mxu3 }
 0x5cb   : > { %v1827_v37 = vpack.c.bf16 %v1776_v14, %v1776_v14 }
 0x5cd   : > { %v1863_v25 = vunpack.c.l.b16 %v1827_v37 }
 0x5d2   : > { %v1778_v51 = vpop.f32.mrf.mxu3 }
 0x5d3   : > { %v1828_v52 = vpack.c.bf16 %v1778_v51, %v1778_v51 }
 0x5d5   : > { %v1864_v62 = vunpack.c.l.b16 %v1828_v52  ;;  %v3113_v52 = vld [vmem:[#allocation2 + $0x28] sm:$0xff] }
 0x5d7   : > { %v1871_v55 = vpack.c.b16 %v1864_v62, %v1863_v25 }
 0x5d9   : > { %1875 = vrot.lane.b32.xlu1 %v1871_v55, %s3342_s12 }
 0x5eb   : > { %v1781_v54 = vpop.f32.mrf.mxu3 }
 0x5ec   : > { %v1829_v24 = vpack.c.bf16 %v1781_v54, %v1781_v54 }
 0x5ee   : > { %v1865_v59 = vunpack.c.l.b16 %v1829_v24  ;;  %v3114_v24 = vld [vmem:[#allocation2 + $0x30] sm:$0xff] }
 0x5f3   : > { %v1783_v56 = vpop.f32.mrf.mxu3 }
 0x5f4   : > { %v1830_v16 = vpack.c.bf16 %v1783_v56, %v1783_v56 }
 0x5f6   : > { %v1866_v3 = vunpack.c.l.b16 %v1830_v16 }
 0x5f8   : > { %v1872_v33 = vpack.c.b16 %v1866_v3, %v1865_v59 }
 0x5fa   : > { %1877 = vrot.lane.b32.xlu2 %v1872_v33, %s3342_s12 }
 0x5fd   : > { %v1817_v61 = vpop.f32.mrf.mxu3 }
 0x5fe   : > { %v1831_v35 = vpack.c.bf16 %v1817_v61, %v1817_v61 }
 0x600   : > { %v1867_v30 = vunpack.c.l.b16 %v1831_v35 }
 0x605   : > { %v1819_v2 = vpop.f32.mrf.mxu3 }
 0x606   : > { %v1832_v5 = vpack.c.bf16 %v1819_v2, %v1819_v2 }
 0x608   : > { %v1868_v12 = vunpack.c.l.b16 %v1832_v5 }
 0x60a   : > { %v1873_v4 = vpack.c.b16 %v1868_v12, %v1867_v30 }
 0x60c   : > { %1879 = vrot.lane.b32.xlu1 %v1873_v4, %s3342_s12  ;;  %v3115_v4 = vld [vmem:[#allocation2 + $0x38] sm:$0xff] }
 0x628   : > { %v1822_v13 = vpop.f32.mrf.mxu3 }
 0x629   : > { %v1833_v17 = vpack.c.bf16 %v1822_v13, %v1822_v13 }
 0x62b   : > { %v1869_v22 = vunpack.c.l.b16 %v1833_v17 }
 0x630   : > { %v1824_v19 = vpop.f32.mrf.mxu3 }
 0x631   : > { %v1834_v15 = vpack.c.bf16 %v1824_v19, %v1824_v19 }
 0x633   : > { %v1870_v23 = vunpack.c.l.b16 %v1834_v15 }
 0x635   : > { %v1874_v39 = vpack.c.b16 %v1870_v23, %v1869_v22 }
 0x637   : > { %1881 = vrot.lane.b32.xlu2 %v1874_v39, %s3342_s12 }
 0x64b   : > { %v1876_v58 = vpop.permute.xlu1 %1875 }
 0x64c   : > { %v1885_v32 = vsel %vm1276_vm13, %v1851_v6, %v1876_v58 }
 0x64d   : > { %2814 = vmatmul.msk.bf16.vlgmr.msra.gmra.mxu1 %vm987_vm2, %v1885_v32 }
 0x654   : > { %v1878_v36 = vpop.permute.xlu2 %1877 }
 0x655   : > { %v1888_v0 = vsel %vm1276_vm13, %v1852_v1, %v1878_v36 }
 0x65d   : > { %2815 = vmatmul.msk.bf16.gmra.mxu1 %vm987_vm2, %v1888_v0 }
 0x67e   : > { %v1880_v28 = vpop.permute.xlu1 %1879 }
 0x67f   : > { %v1891_v29 = vsel %vm1276_vm13, %v1853_v45, %v1880_v28 }
 0x680   : > { %2816 = vmatmul.msk.bf16.gmra.mxu1 %vm987_vm2, %v1891_v29 }
 0x691   : > { %v1882_v60 = vpop.permute.xlu2 %1881 }
 0x692   : > { %v1894_v42 = vsel %vm1276_vm13, %v1854_v47, %v1882_v60 }
 0x693   : > { %2817 = vmatmul.msk.bf16.gmra.mxu1 %vm987_vm2, %v1894_v42 }
 0x6ca   : > { %v1932_v6 = vpop.f32.mrf.mxu1 }
 0x6cb   : > { %v1933_v26 = vadd.f32 %v2989_v18, %v1932_v6 }
 0x6cd   : > { %v4040_v1 = vadd.f32 %v3108_v49, %v1933_v26 }
 0x6cf   : > { %v1962_v53 = vsel %vm987_vm2, %v4040_v1, 0.0 }
 0x6d0   : > { %1963 = vadd.xlane.f32.xlu1 %v1962_v53 }
 0x6d2   : > { %v1934_v9 = vpop.f32.mrf.mxu1 }
 0x6d3   : > { %v1935_v10 = vadd.f32 %v2989_v18, %v1934_v9 }
 0x6d5   : > { %v4044_v34 = vadd.f32 %v3109_v44, %v1935_v10 }
 0x6d7   : > { %v1965_v38 = vsel %vm987_vm2, %v4044_v34, 0.0 }
 0x6d8   : > { %1966 = vadd.xlane.f32.xlu2 %v1965_v38 }
 0x6da   : > { %v1937_v31 = vpop.f32.mrf.mxu1 }
 0x6db   : > { %v1938_v40 = vadd.f32 %v2989_v18, %v1937_v31 }
 0x6dd   : > { %v4048_v7 = vadd.f32 %v3110_v41, %v1938_v40 }
 0x6df   : > { %v1968_v43 = vsel %vm987_vm2, %v4048_v7, 0.0 }
 0x6e0   : > { %1969 = vadd.xlane.f32.xlu0 %v1968_v43 }
 0x6e2   : > { %v1939_v27 = vpop.f32.mrf.mxu1 }
 0x6e3   : > { %v1940_v45 = vadd.f32 %v2989_v18, %v1939_v27  ;;  %v2881_v27 = vld [vmem:[%s3545_s29 + $0x8] sm:$0xff] }
 0x6e4   : > { %2202 = vmatpush.bf16.msra.mxu2 %v2881_v27 }
 0x6e5   : > { %v4052_v46 = vadd.f32 %v3111_v20, %v1940_v45 }
 0x6e7   : > { %v1971_v8 = vsel %vm987_vm2, %v4052_v46, 0.0 }
 0x6e8   : > { %1972 = vadd.xlane.f32.xlu0 %v1971_v8 }
 0x6fd   : > { %v1942_v57 = vpop.f32.mrf.mxu1 }
 0x6fe   : > { %v1943_v21 = vadd.f32 %v2989_v18, %v1942_v57  ;;  %v2880_v57 = vld [vmem:[%s3545_s29] sm:$0xff] }
 0x6ff   : > { %2203 = vmatpush.bf16.msra.mxu2 %v2880_v57 }
 0x700   : > { %v4056_v47 = vadd.f32 %v3112_v50, %v1943_v21 }
 0x702   : > { %v1974_v14 = vsel %vm987_vm2, %v4056_v47, 0.0 }
 0x703   : > { %1975 = vadd.xlane.f32.xlu0 %v1974_v14 }
 0x705   : > { %v1944_v37 = vpop.f32.mrf.mxu1 }
 0x706   : > { %v1945_v51 = vadd.f32 %v2989_v18, %v1944_v37 }
 0x708   : > { %v4060_v25 = vadd.f32 %v3113_v52, %v1945_v51 }
 0x70a   : > { %v1977_v62 = vsel %vm987_vm2, %v4060_v25, 0.0 }
 0x70b   : > { %1978 = vadd.xlane.f32.xlu0 %v1977_v62 }
 0x710   : > { %v1947_v55 = vpop.f32.mrf.mxu1 }
 0x711   : > { %v1948_v54 = vadd.f32 %v2989_v18, %v1947_v55 }
 0x713   : > { %v4064_v56 = vadd.f32 %v3114_v24, %v1948_v54 }
 0x715   : > { %v1980_v16 = vsel %vm987_vm2, %v4064_v56, 0.0 }
 0x716   : > { %1981 = vadd.xlane.f32.xlu2 %v1980_v16 }
 0x718   : > { %v1949_v61 = vpop.f32.mrf.mxu1 }
 0x719   : > { %v1950_v2 = vadd.f32 %v2989_v18, %v1949_v61 }
 0x71b   : > { %v4076_v11 = vadd.f32 %v3115_v4, %v1950_v2 }
 0x71d   : > { %v1983_v17 = vsel %vm987_vm2, %v4076_v11, 0.0 }
 0x743   : > { %v1964_v59 = vpop.xlane.xlu1 %1963 }
 0x744   : > { %v1986_v3 = vmul.f32 %v1964_v59, %v3646_v48 }
 0x746   : > { %v4070_v33 = vsub.f32 %v4040_v1, %v1986_v3 }
 0x748   : > { %v2002_v35 = vmul.f32 %v4070_v33, %v4070_v33 }
 0x74a   : > { %v2010_v5 = vsel %vm987_vm2, %v2002_v35, 0.0 }
 0x74b   : > { %2011 = vadd.xlane.f32.xlu0 %v2010_v5  ;;  %v1967_v30 = vpop.xlane.xlu2 %1966 }
 0x74c   : > { %v1987_v12 = vmul.f32 %v1967_v30, %v3646_v48 }
 0x74e   : > { %v4079_v63 = vsub.f32 %v4044_v34, %v1987_v12 }
 0x750   : > { %v2003_v13 = vmul.f32 %v4079_v63, %v4079_v63 }
 0x752   : > { %v2013_v19 = vsel %vm987_vm2, %v2003_v13, 0.0 }
 0x753   : > { %1984 = vadd.xlane.f32.xlu0 %v1983_v17  ;;  %2014 = vadd.xlane.f32.xlu1 %v2013_v19  ;;  %v1970_v15 = vpop.xlane.xlu0 %1969 }
 0x754   : > { %v1988_v22 = vmul.f32 %v1970_v15, %v3646_v48 }
 0x756   : > { %v4088_v23 = vsub.f32 %v4048_v7, %v1988_v22 }
 0x758   : > { %v2004_v39 = vmul.f32 %v4088_v23, %v4088_v23 }
 0x75a   : > { %v2016_v58 = vsel %vm987_vm2, %v2004_v39, 0.0 }
 0x75b   : > { %2017 = vadd.xlane.f32.xlu1 %v2016_v58  ;;  %v1973_v32 = vpop.xlane.xlu0 %1972  ;;  %v4139_v58 = vld [vmem:[%s836_s14] ss:$0 sm:$0xff] }
 0x75c   : > { %v1989_v36 = vmul.f32 %v1973_v32, %v3646_v48 }
 0x75e   : > { %v4095_v0 = vsub.f32 %v4052_v46, %v1989_v36 }
 0x760   : > { %v2005_v28 = vmul.f32 %v4095_v0, %v4095_v0 }
 0x762   : > { %v2019_v29 = vsel %vm987_vm2, %v2005_v28, 0.0 }
 0x763   : > { %2020 = vadd.xlane.f32.xlu2 %v2019_v29 }
 0x776   : > { %v1976_v60 = vpop.xlane.xlu0 %1975 }
 0x777   : > { %v1990_v42 = vmul.f32 %v1976_v60, %v3646_v48 }
 0x779   : > { %v4102_v18 = vsub.f32 %v4056_v47, %v1990_v42 }
 0x77b   : > { %v2006_v6 = vmul.f32 %v4102_v18, %v4102_v18 }
 0x77d   : > { %v2022_v26 = vsel %vm987_vm2, %v2006_v6, 0.0  ;;  %v4147_v6 = vld [vmem:[%s839_s11] ss:$0 sm:$0xff]  ;;  %s4329_s11 = scalar_lea.vmem [#allocation8], %s3534_s8 }
 0x77e   : > { %2023 = vadd.xlane.f32.xlu0 %v2022_v26  ;;  %v1979_v49 = vpop.xlane.xlu0 %1978 }
 0x77f   : > { %v1991_v53 = vmul.f32 %v1979_v49, %v3646_v48 }
 0x781   : > { %v4109_v9 = vsub.f32 %v4060_v25, %v1991_v53 }
 0x783   : > { %v2007_v10 = vmul.f32 %v4109_v9, %v4109_v9 }
 0x785   : > { %v2025_v44 = vsel %vm987_vm2, %v2007_v10, 0.0 }
 0x786   : > { %2026 = vadd.xlane.f32.xlu1 %v2025_v44 }
 0x789   : > { %v1982_v38 = vpop.xlane.xlu2 %1981 }
 0x78a   : > { %v1992_v31 = vmul.f32 %v1982_v38, %v3646_v48 }
 0x78c   : > { %v4116_v40 = vsub.f32 %v4064_v56, %v1992_v31 }
 0x78e   : > { %v2008_v41 = vmul.f32 %v4116_v40, %v4116_v40 }
 0x790   : > { %v2028_v43 = vsel %vm987_vm2, %v2008_v41, 0.0 }
 0x791   : > { %2029 = vadd.xlane.f32.xlu2 %v2028_v43 }
 0x7be   : > { %v2012_v45 = vpop.xlane.xlu0 %2011 }
 0x7bf   : > { %v2034_v20 = vmul.f32 %v2012_v45, %v3646_v48 }
 0x7c1   : > { %v2042_v8 = vadd.f32 1e-05, %v2034_v20 }
 0x7c3   : > { %3076 = vrsqrt.f32 %v2042_v8  ;;  %vm2056_vm0 = vweird.f32 %v2042_v8 }
 0x7c6   : > { %v2015_v21 = vpop.xlane.xlu1 %2014  ;;  %v1985_v50 = vpop.xlane.xlu0 %1984 }
 0x7c7   : > { %v2035_v14 = vmul.f32 %v2015_v21, %v3646_v48  ;;  %v1993_v37 = vmul.f32 %v1985_v50, %v3646_v48 }
 0x7c9   : > { %v3077_v51 = vpop.eup %3076  ;;  %v2043_v52 = vadd.f32 1e-05, %v2035_v14  ;;  %v4127_v62 = vsub.f32 %v4076_v11, %v1993_v37 }
 0x7ca   : > { %v2051_v55 = vmul.f32 %v3077_v51, %v2042_v8  ;;  %vm2057_vm15 = vweird.f32 %v3077_v51 }
 0x7cb   : > { %3078 = vrsqrt.f32 %v2043_v52  ;;  %v2009_v54 = vmul.f32 %v4127_v62, %v4127_v62  ;;  %vm2058_vm1 = vmor %vm2056_vm0, %vm2057_vm15  ;;  %vm2066_vm4 = vweird.f32 %v2043_v52 }
 0x7cc   : > { %v2052_v24 = vmul.f32 %v3077_v51, %v2051_v55 }
 0x7cd   : > { %v2031_v16 = vsel %vm987_vm2, %v2009_v54, 0.0 }
 0x7ce   : > { %v2053_v59 = vmul.f32 0.5, %v2052_v24  ;;  %v2018_v3 = vpop.xlane.xlu1 %2017  ;;  %2032 = vadd.xlane.f32.xlu0 %v2031_v16 }
 0x7cf   : > { %v2036_v61 = vmul.f32 %v2018_v3, %v3646_v48 }
 0x7d0   : > { %v2054_v35 = vsub.f32 1.5, %v2053_v59 }
 0x7d1   : > { %v3079_v2 = vpop.eup %3078  ;;  %v2044_v5 = vadd.f32 1e-05, %v2036_v61 }
 0x7d2   : > { %v2055_v30 = vmul.f32 %v3077_v51, %v2054_v35  ;;  %v2061_v12 = vmul.f32 %v3079_v2, %v2043_v52  ;;  %vm2067_vm3 = vweird.f32 %v3079_v2 }
 0x7d3   : > { %3080 = vrsqrt.f32 %v2044_v5  ;;  %vm2068_vm5 = vmor %vm2066_vm4, %vm2067_vm3  ;;  %vm2076_vm7 = vweird.f32 %v2044_v5 }
 0x7d4   : > { %v2062_v4 = vmul.f32 %v3079_v2, %v2061_v12  ;;  %v2059_v13 = vsel %vm2058_vm1, %v3077_v51, %v2055_v30 }
 0x7d5   : > { %v2130_v32 = vmul.f32 %v2059_v13, %v4070_v33 }
 0x7d6   : > { %v2063_v17 = vmul.f32 0.5, %v2062_v4  ;;  %v2021_v19 = vpop.xlane.xlu2 %2020 }
 0x7d7   : > { %v2037_v15 = vmul.f32 %v2021_v19, %v3646_v48  ;;  %v2141_v26 = vmul.f32 %v4139_v58, %v2130_v32 }
 0x7d8   : > { %v2064_v22 = vsub.f32 1.5, %v2063_v17 }
 0x7d9   : > { %v3081_v39 = vpop.eup %3080  ;;  %v2045_v36 = vadd.f32 1e-05, %v2037_v15  ;;  %v2152_v38 = vadd.f32 %v4147_v6, %v2141_v26 }
 0x7da   : > { %v2065_v28 = vmul.f32 %v3079_v2, %v2064_v22  ;;  %v2071_v29 = vmul.f32 %v3081_v39, %v2044_v5  ;;  %vm2077_vm6 = vweird.f32 %v3081_v39 }
 0x7db   : > { %3082 = vrsqrt.f32 %v2045_v36  ;;  %vm2078_vm8 = vmor %vm2076_vm7, %vm2077_vm6  ;;  %vm2086_vm10 = vweird.f32 %v2045_v36 }
 0x7dc   : > { %v2069_v60 = vsel %vm2068_vm5, %v3079_v2, %v2065_v28  ;;  %v2072_v42 = vmul.f32 %v3081_v39, %v2071_v29 }
 0x7dd   : > { %v2131_v49 = vmul.f32 %v2069_v60, %v4079_v63 }
 0x7de   : > { %v2073_v53 = vmul.f32 0.5, %v2072_v42 }
 0x7df   : > { %v2142_v33 = vmul.f32 %v4139_v58, %v2131_v49 }
 0x7e0   : > { %v2074_v10 = vsub.f32 1.5, %v2073_v53 }
 0x7e1   : > { %v3083_v44 = vpop.eup %3082  ;;  %v2153_v31 = vadd.f32 %v4147_v6, %v2142_v33 }
 0x7e2   : > { %v2075_v41 = vmul.f32 %v3081_v39, %v2074_v10  ;;  %v2081_v43 = vmul.f32 %v3083_v44, %v2045_v36  ;;  %vm2087_vm9 = vweird.f32 %v3083_v44 }
 0x7e3   : > { %v2160_v27 = vpack.c.bf16 %v2153_v31, %v2152_v38  ;;  %vm2088_vm11 = vmor %vm2086_vm10, %vm2087_vm9  ;;  %vm2333_vm9 = vcmask 523264  }
 0x7e4   : > { %v2082_v45 = vmul.f32 %v3083_v44, %v2081_v43  ;;  %v2079_v20 = vsel %vm2078_vm8, %v3081_v39, %v2075_v41 }
 0x7e5   : > { %2826 = vmatmul.msk.bf16.vlgmr.msra.gmra.mxu2 %vm987_vm2, %v2160_v27  ;;  %v2132_v57 = vmul.f32 %v2079_v20, %v4088_v23 }
 0x7e6   : > { %v2083_v63 = vmul.f32 0.5, %v2082_v45 }
 0x7e7   : > { %v2143_v37 = vmul.f32 %v4139_v58, %v2132_v57 }
 0x7e8   : > { %v2084_v8 = vsub.f32 1.5, %v2083_v63 }
 0x7e9   : > { %v2154_v55 = vadd.f32 %v4147_v6, %v2143_v37 }
 0x7ea   : > { %v2085_v21 = vmul.f32 %v3083_v44, %v2084_v8 }
 0x7ec   : > { %v2089_v50 = vsel %vm2088_vm11, %v3083_v44, %v2085_v21 }
 0x7ed   : > { %v2133_v14 = vmul.f32 %v2089_v50, %v4095_v0 }
 0x7ef   : > { %v2144_v51 = vmul.f32 %v4139_v58, %v2133_v14 }
 0x7f1   : > { %v2024_v52 = vpop.xlane.xlu0 %2023  ;;  %v2155_v54 = vadd.f32 %v4147_v6, %v2144_v51 }
 0x7f2   : > { %v2038_v24 = vmul.f32 %v2024_v52, %v3646_v48 }
 0x7f3   : > { %v2161_v16 = vpack.c.bf16 %v2155_v54, %v2154_v55 }
 0x7f4   : > { %v2046_v59 = vadd.f32 1e-05, %v2038_v24 }
 0x7f5   : > { %2827 = vmatmul.msk.bf16.gmra.mxu2 %vm987_vm2, %v2161_v16 }
 0x7f6   : > { %3084 = vrsqrt.f32 %v2046_v59  ;;  %vm2096_vm13 = vweird.f32 %v2046_v59 }
 0x7f9   : > { %v2027_v23 = vpop.xlane.xlu1 %2026 }
 0x7fa   : > { %v2039_v3 = vmul.f32 %v2027_v23, %v3646_v48 }
 0x7fc   : > { %v3085_v0 = vpop.eup %3084  ;;  %v2047_v61 = vadd.f32 1e-05, %v2039_v3  ;;  %v2883_v3 = vld [vmem:[%s3592_s0 + $0x8] sm:$0xff] }
 0x7fd   : > { %v2091_v35 = vmul.f32 %v3085_v0, %v2046_v59  ;;  %vm2097_vm12 = vweird.f32 %v3085_v0  ;;  %v2885_v59 = vld [vmem:[%s3592_s0 + $0x18] sm:$0xff] }
 0x7fe   : > { %3086 = vrsqrt.f32 %v2047_v61  ;;  %vm2098_vm14 = vmor %vm2096_vm13, %vm2097_vm12  ;;  %vm2106_vm0 = vweird.f32 %v2047_v61  ;;  %2350 = vmatpush.bf16.msrb.mxu0 %v2885_v59 }
 0x7ff   : > { %v2092_v2 = vmul.f32 %v3085_v0, %v2091_v35 }
 0x801   : > { %v2093_v5 = vmul.f32 0.5, %v2092_v2 }
 0x803   : > { %v2094_v30 = vsub.f32 1.5, %v2093_v5 }
 0x804   : > { %v3087_v12 = vpop.eup %3086  ;;  %v2030_v53 = vpop.xlane.xlu2 %2029 }
 0x805   : > { %v2095_v4 = vmul.f32 %v3085_v0, %v2094_v30  ;;  %v2101_v13 = vmul.f32 %v3087_v12, %v2047_v61  ;;  %vm2107_vm15 = vweird.f32 %v3087_v12  ;;  %v2882_v61 = vld [vmem:[%s3592_s0] sm:$0xff] }
 0x806   : > { %vm2108_vm1 = vmor %vm2106_vm0, %vm2107_vm15 }
 0x807   : > { %v2102_v17 = vmul.f32 %v3087_v12, %v2101_v13  ;;  %v2099_v19 = vsel %vm2098_vm14, %v3085_v0, %v2095_v4  ;;  %v4185_v0 = vld [vmem:[%s4329_s11] ss:$0 sm:$0xff] }
 0x808   : > { %v2134_v39 = vmul.f32 %v2099_v19, %v4102_v18  ;;  %v2040_v18 = vmul.f32 %v2030_v53, %v3646_v48 }
 0x809   : > { %v2103_v15 = vmul.f32 0.5, %v2102_v17 }
 0x80a   : > { %v2145_v29 = vmul.f32 %v4139_v58, %v2134_v39  ;;  %v2048_v33 = vadd.f32 1e-05, %v2040_v18 }
 0x80b   : > { %v2104_v22 = vsub.f32 1.5, %v2103_v15 }
 0x80c   : > { %v2156_v42 = vadd.f32 %v4147_v6, %v2145_v29  ;;  %3088 = vrsqrt.f32 %v2048_v33  ;;  %vm2116_vm4 = vweird.f32 %v2048_v33 }
 0x80d   : > { %v2105_v32 = vmul.f32 %v3087_v12, %v2104_v22 }
 0x80f   : > { %v2109_v36 = vsel %vm2108_vm1, %v3087_v12, %v2105_v32 }
 0x810   : > { %v2135_v28 = vmul.f32 %v2109_v36, %v4109_v9 }
 0x812   : > { %v2146_v60 = vmul.f32 %v4139_v58, %v2135_v28  ;;  %v3089_v10 = vpop.eup %3088 }
 0x813   : > { %v2111_v44 = vmul.f32 %v3089_v10, %v2048_v33  ;;  %vm2117_vm3 = vweird.f32 %v3089_v10 }
 0x814   : > { %v2157_v26 = vadd.f32 %v4147_v6, %v2146_v60  ;;  %vm2118_vm5 = vmor %vm2116_vm4, %vm2117_vm3 }
 0x815   : > { %v2112_v38 = vmul.f32 %v3089_v10, %v2111_v44 }
 0x816   : > { %v2162_v49 = vpack.c.bf16 %v2157_v26, %v2156_v42 }
 0x817   : > { %v2113_v43 = vmul.f32 0.5, %v2112_v38 }
 0x818   : > { %2828 = vmatmul.msk.bf16.gmra.mxu2 %vm987_vm2, %v2162_v49 }
 0x819   : > { %v2114_v27 = vsub.f32 1.5, %v2113_v43 }
 0x81b   : > { %v2115_v20 = vmul.f32 %v3089_v10, %v2114_v27 }
 0x81d   : > { %v2119_v57 = vsel %vm2118_vm5, %v3089_v10, %v2115_v20 }
 0x81e   : > { %v2136_v14 = vmul.f32 %v2119_v57, %v4116_v40  ;;  %v2884_v40 = vld [vmem:[%s3592_s0 + $0x10] sm:$0xff]  ;;  %s4330_s0 = scalar_lea.vmem [#allocation9], %s3534_s8 }
 0x81f   : > { %2351 = vmatpush.bf16.msrb.mxu0 %v2884_v40 }
 0x820   : > { %v2147_v55 = vmul.f32 %v4139_v58, %v2136_v14 }
 0x822   : > { %v2158_v24 = vadd.f32 %v4147_v6, %v2147_v55 }
 0x823   : > { %2352 = vmatpush.bf16.msrb.mxu0 %v2883_v3 }
 0x827   : > { %2353 = vmatpush.bf16.msrb.mxu0 %v2882_v61 }
 0x841   : > { %v2033_v9 = vpop.xlane.xlu0 %2032 }
 0x842   : > { %v2041_v31 = vmul.f32 %v2033_v9, %v3646_v48 }
 0x844   : > { %v2049_v41 = vadd.f32 1e-05, %v2041_v31 }
 0x846   : > { %3090 = vrsqrt.f32 %v2049_v41  ;;  %vm2126_vm7 = vweird.f32 %v2049_v41 }
 0x84c   : > { %v3091_v45 = vpop.eup %3090 }
 0x84d   : > { %v2121_v63 = vmul.f32 %v3091_v45, %v2049_v41  ;;  %vm2127_vm6 = vweird.f32 %v3091_v45 }
 0x84e   : > { %vm2128_vm8 = vmor %vm2126_vm7, %vm2127_vm6 }
 0x84f   : > { %v2122_v8 = vmul.f32 %v3091_v45, %v2121_v63 }
 0x851   : > { %v2123_v21 = vmul.f32 0.5, %v2122_v8 }
 0x853   : > { %v2124_v50 = vsub.f32 1.5, %v2123_v21 }
 0x855   : > { %v2125_v37 = vmul.f32 %v3091_v45, %v2124_v50 }
 0x857   : > { %v2129_v51 = vsel %vm2128_vm8, %v3091_v45, %v2125_v37 }
 0x858   : > { %v2137_v52 = vmul.f32 %v2129_v51, %v4127_v62 }
 0x85a   : > { %v2148_v54 = vmul.f32 %v4139_v58, %v2137_v52 }
 0x85c   : > { %v2159_v16 = vadd.f32 %v4147_v6, %v2148_v54 }
 0x85e   : > { %v2163_v23 = vpack.c.bf16 %v2159_v16, %v2158_v24 }
 0x860   : > { %2829 = vmatmul.msk.bf16.gmra.mxu2 %vm987_vm2, %v2163_v23 }
 0x868   : > { %v2205_v62 = vpop.f32.mrf.mxu2 }
 0x869   : > { %v2206_v58 = vadd.f32 %v4185_v0, %v2205_v62 }
 0x86b   : > { %v2225_v35 = vmul.f32 %v2206_v58, %v2206_v58 }
 0x86d   : > { %v2233_v2 = vmul.f32 %v2225_v35, %v2206_v58 }
 0x86f   : > { %v2241_v6 = vmul.f32 0.044715, %v2233_v2 }
 0x870   : > { %v2207_v5 = vpop.f32.mrf.mxu2 }
 0x871   : > { %v2249_v30 = vadd.f32 %v2241_v6, %v2206_v58  ;;  %v2208_v12 = vadd.f32 %v4185_v0, %v2207_v5 }
 0x873   : > { %v2257_v4 = vmul.f32 0.7978846, %v2249_v30  ;;  %v2226_v13 = vmul.f32 %v2208_v12, %v2208_v12 }
 0x875   : > { %v2234_v17 = vmul.f32 %v2226_v13, %v2208_v12  ;;  %3092 = vtanh.f32 %v2257_v4 }
 0x877   : > { %v2242_v19 = vmul.f32 0.044715, %v2234_v17 }
 0x878   : > { %v2210_v15 = vpop.f32.mrf.mxu2 }
 0x879   : > { %v2250_v22 = vadd.f32 %v2242_v19, %v2208_v12  ;;  %v2211_v39 = vadd.f32 %v4185_v0, %v2210_v15 }
 0x87b   : > { %v2258_v32 = vmul.f32 0.7978846, %v2250_v22  ;;  %v2227_v36 = vmul.f32 %v2211_v39, %v2211_v39  ;;  %v3093_v28 = vpop.eup %3092 }
 0x87c   : > { %v2273_v42 = vadd.f32 1.0, %v3093_v28 }
 0x87d   : > { %3094 = vtanh.f32 %v2258_v32  ;;  %v2235_v29 = vmul.f32 %v2227_v36, %v2211_v39 }
 0x87e   : > { %v2281_v44 = vmul.f32 0.5, %v2273_v42 }
 0x87f   : > { %v2243_v60 = vmul.f32 0.044715, %v2235_v29 }
 0x880   : > { %v2212_v26 = vpop.f32.mrf.mxu2  ;;  %v2289_v43 = vmul.f32 %v2281_v44, %v2206_v58 }
 0x881   : > { %v2251_v49 = vadd.f32 %v2243_v60, %v2211_v39  ;;  %v2213_v53 = vadd.f32 %v4185_v0, %v2212_v26 }
 0x883   : > { %v3095_v18 = vpop.eup %3094  ;;  %v2259_v33 = vmul.f32 0.7978846, %v2251_v49  ;;  %v2228_v10 = vmul.f32 %v2213_v53, %v2213_v53 }
 0x884   : > { %v2274_v38 = vadd.f32 1.0, %v3095_v18 }
 0x885   : > { %v2236_v9 = vmul.f32 %v2228_v10, %v2213_v53  ;;  %3096 = vtanh.f32 %v2259_v33 }
 0x886   : > { %v2282_v31 = vmul.f32 0.5, %v2274_v38 }
 0x887   : > { %v2244_v41 = vmul.f32 0.044715, %v2236_v9 }
 0x888   : > { %v2290_v27 = vmul.f32 %v2282_v31, %v2208_v12 }
 0x889   : > { %v2252_v45 = vadd.f32 %v2244_v41, %v2213_v53 }
 0x88a   : > { %v2297_v20 = vpack.c.bf16 %v2290_v27, %v2289_v43 }
 0x88b   : > { %v2260_v63 = vmul.f32 0.7978846, %v2252_v45  ;;  %v3097_v8 = vpop.eup %3096 }
 0x88c   : > { %2846 = vmatmul.msk.bf16.vlgmr.msrb.gmra.mxu0 %vm2333_vm9, %v2297_v20  ;;  %v2275_v57 = vadd.f32 1.0, %v3097_v8 }
 0x88d   : > { %3098 = vtanh.f32 %v2260_v63 }
 0x88e   : > { %v2283_v14 = vmul.f32 0.5, %v2275_v57 }
 0x890   : > { %v2291_v51 = vmul.f32 %v2283_v14, %v2211_v39 }
 0x893   : > { %v3099_v21 = vpop.eup %3098 }
 0x894   : > { %v2276_v50 = vadd.f32 1.0, %v3099_v21 }
 0x896   : > { %v2284_v37 = vmul.f32 0.5, %v2276_v50 }
 0x898   : > { %v2292_v52 = vmul.f32 %v2284_v37, %v2213_v53 }
 0x89a   : > { %v2298_v55 = vpack.c.bf16 %v2292_v52, %v2291_v51 }
 0x89b   : > { %v2215_v54 = vpop.f32.mrf.mxu2 }
 0x89c   : > { %v2216_v24 = vadd.f32 %v4185_v0, %v2215_v54  ;;  %2847 = vmatmul.msk.bf16.gmra.mxu0 %vm2333_vm9, %v2298_v55 }
 0x89e   : > { %v2229_v16 = vmul.f32 %v2216_v24, %v2216_v24 }
 0x8a0   : > { %v2237_v59 = vmul.f32 %v2229_v16, %v2216_v24 }
 0x8a2   : > { %v2245_v23 = vmul.f32 0.044715, %v2237_v59 }
 0x8a3   : > { %v2217_v40 = vpop.f32.mrf.mxu2 }
 0x8a4   : > { %v2253_v3 = vadd.f32 %v2245_v23, %v2216_v24  ;;  %v2218_v62 = vadd.f32 %v4185_v0, %v2217_v40 }
 0x8a6   : > { %v2261_v61 = vmul.f32 0.7978846, %v2253_v3  ;;  %v2230_v58 = vmul.f32 %v2218_v62, %v2218_v62 }
 0x8a8   : > { %v2238_v35 = vmul.f32 %v2230_v58, %v2218_v62  ;;  %3100 = vtanh.f32 %v2261_v61 }
 0x8aa   : > { %v2246_v2 = vmul.f32 0.044715, %v2238_v35 }
 0x8ac   : > { %v2254_v6 = vadd.f32 %v2246_v2, %v2218_v62 }
 0x8ae   : > { %v2262_v5 = vmul.f32 0.7978846, %v2254_v6  ;;  %v3101_v30 = vpop.eup %3100 }
 0x8af   : > { %v2277_v12 = vadd.f32 1.0, %v3101_v30 }
 0x8b0   : > { %3102 = vtanh.f32 %v2262_v5 }
 0x8b1   : > { %v2285_v17 = vmul.f32 0.5, %v2277_v12 }
 0x8b3   : > { %v2293_v15 = vmul.f32 %v2285_v17, %v2216_v24 }
 0x8b6   : > { %v3103_v4 = vpop.eup %3102 }
 0x8b7   : > { %v2278_v13 = vadd.f32 1.0, %v3103_v4 }
 0x8b9   : > { %v2286_v19 = vmul.f32 0.5, %v2278_v13 }
 0x8bb   : > { %v2294_v22 = vmul.f32 %v2286_v19, %v2218_v62 }
 0x8bd   : > { %v2299_v39 = vpack.c.bf16 %v2294_v22, %v2293_v15 }
 0x8bf   : > { %2848 = vmatmul.msk.bf16.gmra.mxu0 %vm2333_vm9, %v2299_v39 }
 0x8e3   : > { %v2220_v32 = vpop.f32.mrf.mxu2 }
 0x8e4   : > { %v2221_v36 = vadd.f32 %v4185_v0, %v2220_v32 }
 0x8e6   : > { %v2231_v28 = vmul.f32 %v2221_v36, %v2221_v36 }
 0x8e8   : > { %v2239_v29 = vmul.f32 %v2231_v28, %v2221_v36 }
 0x8ea   : > { %v2247_v60 = vmul.f32 0.044715, %v2239_v29 }
 0x8eb   : > { %v2222_v42 = vpop.f32.mrf.mxu2 }
 0x8ec   : > { %v2255_v26 = vadd.f32 %v2247_v60, %v2221_v36  ;;  %v2223_v49 = vadd.f32 %v4185_v0, %v2222_v42  ;;  %v2993_v0 = vld [vmem:[%s4330_s0] ss:$0 sm:$0xff] }
 0x8ee   : > { %v2263_v53 = vmul.f32 0.7978846, %v2255_v26  ;;  %v2232_v18 = vmul.f32 %v2223_v49, %v2223_v49 }
 0x8f0   : > { %v2240_v33 = vmul.f32 %v2232_v18, %v2223_v49  ;;  %3104 = vtanh.f32 %v2263_v53 }
 0x8f2   : > { %v2248_v10 = vmul.f32 0.044715, %v2240_v33 }
 0x8f4   : > { %v2256_v44 = vadd.f32 %v2248_v10, %v2223_v49 }
 0x8f6   : > { %v2264_v38 = vmul.f32 0.7978846, %v2256_v44  ;;  %v3105_v9 = vpop.eup %3104 }
 0x8f7   : > { %v2279_v31 = vadd.f32 1.0, %v3105_v9 }
 0x8f8   : > { %3106 = vtanh.f32 %v2264_v38 }
 0x8f9   : > { %v2287_v27 = vmul.f32 0.5, %v2279_v31 }
 0x8fb   : > { %v2295_v20 = vmul.f32 %v2287_v27, %v2221_v36 }
 0x8fe   : > { %v3107_v41 = vpop.eup %3106 }
 0x8ff   : > { %v2280_v43 = vadd.f32 1.0, %v3107_v41 }
 0x901   : > { %v2288_v45 = vmul.f32 0.5, %v2280_v43 }
 0x903   : > { %v2296_v63 = vmul.f32 %v2288_v45, %v2223_v49 }
 0x905   : > { %v2300_v8 = vpack.c.bf16 %v2296_v63, %v2295_v20 }
 0x907   : > { %2849 = vmatmul.msk.bf16.gmra.mxu0 %vm2333_vm9, %v2300_v8 }
 0x909   : > { %v2355_v57 = vpop.f32.mrf.mxu0 }
 0x90a   : > { %v2375_v21 = vadd.f32 %v2355_v57, %v4040_v1 }
 0x90c   : > { %v2387_v50 = vadd.f32 %v2993_v0, %v2375_v21 }
 0x90e   : > { %2395 = vst.msk [vmem:[#allocation2] sm:$0xff] %vm987_vm2, %v2387_v50 }
 0x911   : > { %v2357_v14 = vpop.f32.mrf.mxu0 }
 0x912   : > { %v2376_v37 = vadd.f32 %v2357_v14, %v4044_v34 }
 0x914   : > { %v2388_v51 = vadd.f32 %v2993_v0, %v2376_v37 }
 0x916   : > { %2396 = vst.msk [vmem:[#allocation2 + $0x8] sm:$0xff] %vm987_vm2, %v2388_v51 }
 0x919   : > { %v2360_v52 = vpop.f32.mrf.mxu0 }
 0x91a   : > { %v2377_v55 = vadd.f32 %v2360_v52, %v4048_v7 }
 0x91c   : > { %v2389_v54 = vadd.f32 %v2993_v0, %v2377_v55 }
 0x91e   : > { %2397 = vst.msk [vmem:[#allocation2 + $0x10] sm:$0xff] %vm987_vm2, %v2389_v54 }
 0x921   : > { %v2362_v24 = vpop.f32.mrf.mxu0 }
 0x922   : > { %v2378_v16 = vadd.f32 %v2362_v24, %v4052_v46 }
 0x924   : > { %v2390_v59 = vadd.f32 %v2993_v0, %v2378_v16 }
 0x926   : > { %2398 = vst.msk [vmem:[#allocation2 + $0x18] sm:$0xff] %vm987_vm2, %v2390_v59 }
 0x93c   : > { %v2365_v1 = vpop.f32.mrf.mxu0 }
 0x93d   : > { %v2379_v23 = vadd.f32 %v2365_v1, %v4056_v47 }
 0x93f   : > { %v2391_v40 = vadd.f32 %v2993_v0, %v2379_v23 }
 0x941   : > { %2399 = vst.msk [vmem:[#allocation2 + $0x20] sm:$0xff] %vm987_vm2, %v2391_v40 }
 0x944   : > { %v2367_v34 = vpop.f32.mrf.mxu0 }
 0x945   : > { %v2380_v3 = vadd.f32 %v2367_v34, %v4060_v25 }
 0x947   : > { %v2392_v62 = vadd.f32 %v2993_v0, %v2380_v3 }
 0x949   : > { %2400 = vst.msk [vmem:[#allocation2 + $0x28] sm:$0xff] %vm987_vm2, %v2392_v62 }
 0x984   : > { %v2370_v7 = vpop.f32.mrf.mxu0 }
 0x985   : > { %v2381_v61 = vadd.f32 %v2370_v7, %v4064_v56 }
 0x987   : > { %v2393_v58 = vadd.f32 %v2993_v0, %v2381_v61 }
 0x989   : > { %2401 = vst.msk [vmem:[#allocation2 + $0x30] sm:$0xff] %vm987_vm2, %v2393_v58 }
 0x98c   : > { %v2372_v46 = vpop.f32.mrf.mxu0 }
 0x98d   : > { %v2382_v35 = vadd.f32 %v2372_v46, %v4076_v11  ;;  %2406 = sbr.rel (%p2850_p1) target bundleno = 2871 (0xb37), region = 116 }
 0x98f   : > { %v2394_v2 = vadd.f32 %v2993_v0, %v2382_v35 }
 0x991   : > { %2402 = vst.msk [vmem:[#allocation2 + $0x38] sm:$0xff] %vm987_vm2, %v2394_v2 }
 0x992   : > { %v2411_v47 = vrot.slane %v2391_v40, 7  ;;  %vm2412_vm10 = vcmask 1041409   ;;  %vm2415_vm11 = vcmask 254976   ;;  %v2887_v22 = vld [vmem:[%s4331_s20 + $0x8] sm:$0xff]  ;;  %v2886_v39 = vld [vmem:[%s4331_s20] sm:$0xff] }
 0x993   : > { %2502 = vmatpush.bf16.msra.mxu0 %v2887_v22  ;;  %v3116_v18 = vld [vmem:[%s4332_s5] ss:$0 sm:$0xff] }
 0x994   : > { %v2413_v25 = vsel %vm2412_vm10, %v2411_v47, %v2387_v50  ;;  %v3118_v21 = vld [vmem:[%s4334_s16] ss:$0 sm:$0xff] }
 0x995   : > { %v2416_v6 = vsel %vm2415_vm11, %v2413_v25, 0.0 }
 0x996   : > { %2417 = vadd.xlane.f32.xlu0 %v2416_v6 }
 0x997   : > { %2503 = vmatpush.bf16.msra.mxu0 %v2886_v39 }
 0xa09   : > { %v2418_v56 = vpop.xlane.xlu0 %2417 }
 0xa0a   : > { %v2419_v5 = vmul.f32 %v2418_v56, %v3646_v48 }
 0xa0c   : > { %v2421_v30 = vrot.slane %v2419_v5, 1  ;;  %v2424_v12 = vsub.f32 %v2387_v50, %v2419_v5 }
 0xa0e   : > { %v2425_v4 = vsub.f32 %v2391_v40, %v2421_v30  ;;  %v2426_v13 = vmul.f32 %v2424_v12, %v2424_v12 }
 0xa10   : > { %v2427_v11 = vmul.f32 %v2425_v4, %v2425_v4 }
 0xa12   : > { %v2430_v17 = vrot.slane %v2427_v11, 7 }
 0xa14   : > { %v2431_v19 = vsel %vm2412_vm10, %v2430_v17, %v2426_v13 }
 0xa15   : > { %v2433_v15 = vsel %vm2415_vm11, %v2431_v19, 0.0 }
 0xa16   : > { %2434 = vadd.xlane.f32.xlu0 %v2433_v15 }
 0xa89   : > { %v2435_v32 = vpop.xlane.xlu0 %2434 }
 0xa8a   : > { %v2436_v36 = vmul.f32 %v2435_v32, %v3646_v48  ;;  %v3117_v48 = vld [vmem:[%s4333_s21] ss:$0 sm:$0xff] }
 0xa8c   : > { %v2437_v28 = vadd.f32 1e-05, %v2436_v36 }
 0xa8e   : > { %3119 = vrsqrt.f32 %v2437_v28  ;;  %vm2444_vm13 = vweird.f32 %v2437_v28 }
 0xa94   : > { %v3120_v29 = vpop.eup %3119 }
 0xa95   : > { %v2439_v60 = vmul.f32 %v3120_v29, %v2437_v28  ;;  %vm2445_vm12 = vweird.f32 %v3120_v29 }
 0xa96   : > { %vm2446_vm14 = vmor %vm2444_vm13, %vm2445_vm12 }
 0xa97   : > { %v2440_v42 = vmul.f32 %v3120_v29, %v2439_v60 }
 0xa99   : > { %v2441_v26 = vmul.f32 0.5, %v2440_v42 }
 0xa9b   : > { %v2442_v49 = vsub.f32 1.5, %v2441_v26 }
 0xa9d   : > { %v2443_v53 = vmul.f32 %v3120_v29, %v2442_v49 }
 0xa9f   : > { %v2447_v33 = vsel %vm2446_vm14, %v3120_v29, %v2443_v53 }
 0xaa0   : > { %v2449_v10 = vrot.slane %v2447_v33, 1  ;;  %v2452_v44 = vmul.f32 %v2447_v33, %v2424_v12 }
 0xaa2   : > { %v2453_v38 = vmul.f32 %v2449_v10, %v2425_v4  ;;  %v2457_v9 = vmul.f32 %v3116_v18, %v2452_v44 }
 0xaa4   : > { %v2458_v31 = vmul.f32 %v3116_v18, %v2453_v38  ;;  %v2462_v41 = vadd.f32 %v3117_v48, %v2457_v9 }
 0xaa6   : > { %v2463_v43 = vadd.f32 %v3117_v48, %v2458_v31  ;;  %v2464_v27 = vpack.c.bf16 %v2462_v41, %v2462_v41 }
 0xaa8   : > { %v2465_v45 = vpack.c.bf16 %v2463_v43, %v2463_v43  ;;  %v2476_v63 = vunpack.c.l.b16 %v2464_v27 }
 0xaaa   : > { %v2477_v20 = vunpack.c.l.b16 %v2465_v45 }
 0xaac   : > { %v2478_v8 = vrot.slane %v2477_v20, 7 }
 0xaae   : > { %v2479_v0 = vsel %vm2412_vm10, %v2478_v8, %v2476_v63 }
 0xaaf   : > { %v2480_v57 = vpack.c.b16 %v2479_v0, %v2479_v0 }
 0xab1   : > { %2859 = vmatmul.msk.bf16.vlgmr.msra.gmra.mxu0 %vm987_vm2, %v2480_v57 }
 0xb2e   : > { %v2505_v50 = vpop.f32.mrf.mxu0 }
 0xb2f   : > { %v2506_v14 = vadd.f32 %v3118_v21, %v2505_v50 }
 0xb31   : > { %2509 = vst [vmem:[#allocation11] sm:$0x3] %v2506_v14 }
 0xb36   : > { %v2507_v37 = vpop.f32.mrf.mxu0 }
 0xb37 PF: > { %p2926_p2 = scmp.eq.s32.totalorder %s3468_s1, 1  ;;  %s4335_s22 = sld [smem:[#allocation36_spill]] }
 0xb38   : > { %s3343_s6 = smov [#allocation11]  }
 0xb39   : > { %s2518_s15 = sshll.u32 %s3343_s6, 4  ;;  %s2519_s15 = int_to_ptr.vmem [resolvable:$true] %s2518_s15 }
 0xb3d   : > { %s2520_s27 = sshll.u32 %s4335_s22, 4  ;;  %s2521_s27 = int_to_ptr.hbm [resolvable:$true] %s2520_s27 }
 0xb3e   : > { %2909 = dma.vmem_to_hbm [thread:$0]  (%p2926_p2), %s2519_s15, 32, %s2521_s27, [#allocation5]  }
 0xb3f   : > { %3306 = dma.done.wait (%p2926_p2), [#allocation5], 32  }
 0xb40   : > { %3308 = vsyncadd (%p2926_p2), [#allocation5], 4294967264 }
 0xb41 PF: > { %s4336_s10 = sld [smem:[#allocation18_spill]]  ;;  %s4341_s27 = smov %s3315_s28 }
 0xb42   : > { %s4337_s11 = sld [smem:[#allocation16_spill]] }
 0xb43   : > { %s4338_s29 = sld [smem:[#allocation20_spill]] }
 0xb44   : > { %s4339_s30 = sld [smem:[#allocation17_spill]] }
 0xb45   : > { %s4340_s0 = sld [smem:[#allocation19_spill]] }
 0xb47   : > { %s38_s19 = sadd.s32 1, %s4336_s10  }
 0xb48   : > { %p35_p3 = scmp.ge.s32.totalorder %s38_s19, 4   ;;  %s4342_s28 = smov %s4337_s11 }
 0xb4a   :  { %37 = sbr.rel (!%p35_p3) target bundleno = 26 (0x1a), region = 199 }
 0xb4f   :  { %2534 = vsyncpa [#allocation4], 1 }
 0xb50   :  { %2536 = vsyncpa [#allocation4 + $0x1], 1 }
 0xb51   :  { %2537 = vsyncpa [#allocation7], 1 }
 0xb52   :  { %2539 = vsyncpa [#allocation7 + $0x1], 1 }
 0xb53   :  { %2540 = vsyncpa [#allocation10], 1 }
 0xb54   :  { %2542 = vsyncpa [#allocation10 + $0x1], 1 }
 0xb55   :  { %2543 = vsyncpa [#allocation5], 1 }
 0xb56   :  { %2545 = vsyncpa [#allocation5 + $0x1], 1 }

</bundles_post_ra>
